<compile_context>
chip_gen: v6e
topology: v6e:2x2x1
jax: 0.10.0
libtpu: 0.0.40
codegen_flags: <defaults>
</compile_context>

<pallas_src>
import functools
import math

import jax
import jax.numpy as jnp
from jax.experimental import pallas as pl
from jax.experimental.pallas import tpu as pltpu


def _layernorm(z, eps=1e-6):
    mu = jnp.mean(z, axis=-1, keepdims=True)
    var = jnp.mean((z - mu) ** 2, axis=-1, keepdims=True)
    return (z - mu) * jax.lax.rsqrt(var + eps)


def _gelu_tanh(z):
    # PyTorch nn.GELU(approximate='tanh')
    return 0.5 * z * (1.0 + jnp.tanh(jnp.sqrt(2.0 / jnp.pi) * (z + 0.044715 * z * z * z)))


def _silu_bf16(c):
    return (c * jax.nn.sigmoid(c)).astype(jnp.bfloat16)


# ---------------------------------------------------------------------------
# Pass 1: adaLN (msa half) + modulated LN + QKV, head-major / lane-padded output.
# ---------------------------------------------------------------------------
def _qkv_kernel(num_heads, hd_pad,
                x_ref, c_ref,
                w_ada_ref, b_ada_ref,
                w_q_ref, b_q_ref, w_k_ref, b_k_ref, w_v_ref, b_v_ref,
                q_ref, k_ref, v_ref):
    x = x_ref[0].astype(jnp.float32)          # (tN, D)
    c = c_ref[0].astype(jnp.float32)          # (tN, D)
    D = x.shape[-1]

    # adaLN, msa half only: SiLU(c) @ W_ada[:, :2D] -> shift_msa, scale_msa
    mod = jnp.dot(_silu_bf16(c), w_ada_ref[...],
                  preferred_element_type=jnp.float32) + b_ada_ref[...]
    shift_msa = mod[:, :D]
    scale_msa = mod[:, D:]

    h = (_layernorm(x) * (1.0 + scale_msa) + shift_msa).astype(jnp.bfloat16)

    # Q / K / V projections with head-grouped, lane-padded (hd_pad % 128 == 0) weights.
    # The 1/sqrt(head_dim) softmax scale is folded into w_q / b_q on the host.
    # Each head slice is a lane-aligned window -> direct store into the head-major output,
    # no stack / concatenate relayout.
    for w_ref, b_ref, out_ref in ((w_q_ref, b_q_ref, q_ref),
                                  (w_k_ref, b_k_ref, k_ref),
                                  (w_v_ref, b_v_ref, v_ref)):
        y = jnp.dot(h, w_ref[...], preferred_element_type=jnp.float32) + b_ref[...]
        for head in range(num_heads):
            out_ref[0, head] = y[:, head * hd_pad:(head + 1) * hd_pad].astype(out_ref.dtype)


# ---------------------------------------------------------------------------
# Pass 2: attention (online softmax over KV tiles) + proj + residual, adaLN (mlp half)
#         + modulated LN + MLP + residual.
# ---------------------------------------------------------------------------
def _attn_mlp_kernel(num_heads, hd_pad, kv_tile,
                     x_ref, c_ref, q_ref, k_ref, v_ref,
                     w_ada_ref, b_ada_ref,
                     w_proj_ref, b_proj_ref,
                     w_fc1_ref, b_fc1_ref, w_fc2_ref, b_fc2_ref,
                     o_ref):
    x = x_ref[0].astype(jnp.float32)          # (tQ, D)
    c = c_ref[0].astype(jnp.float32)          # (tQ, D)
    tq, D = x.shape
    H = num_heads

    # adaLN, remaining chunks: gate_msa, shift_mlp, scale_mlp, gate_mlp
    mod = jnp.dot(_silu_bf16(c), w_ada_ref[...],
                  preferred_element_type=jnp.float32) + b_ada_ref[...]
    gate_msa = mod[:, 0 * D:1 * D]
    shift_mlp = mod[:, 1 * D:2 * D]
    scale_mlp = mod[:, 2 * D:3 * D]
    gate_mlp = mod[:, 3 * D:4 * D]

    # ---- attention: online softmax, scores never exceed (H, tQ, kv_tile) ----
    qh = q_ref[0]                              # (H, tQ, hd_pad) bf16, scale pre-folded
    n_kv = k_ref.shape[2]
    num_kv = n_kv // kv_tile

    m = jnp.full((H, tq, 1), -jnp.inf, dtype=jnp.float32)
    l = jnp.zeros((H, tq, 1), dtype=jnp.float32)
    acc = jnp.zeros((H, tq, hd_pad), dtype=jnp.float32)
    for kt in range(num_kv):                   # static, fully unrolled (small trip count)
        ks = k_ref[0, :, kt * kv_tile:(kt + 1) * kv_tile, :]   # (H, tK, hd_pad) bf16
        vs = v_ref[0, :, kt * kv_tile:(kt + 1) * kv_tile, :]
        s = jnp.einsum('hqd,hkd->hqk', qh, ks, preferred_element_type=jnp.float32)
        m_new = jnp.maximum(m, s.max(axis=-1, keepdims=True))
        alpha = jnp.exp(m - m_new)
        p = jnp.exp(s - m_new)
        l = alpha * l + p.sum(axis=-1, keepdims=True)
        acc = alpha * acc + jnp.einsum('hqk,hkd->hqd', p.astype(jnp.bfloat16), vs,
                                       preferred_element_type=jnp.float32)
        m = m_new
    o = (acc * pl.reciprocal(l, approx=True)).astype(jnp.bfloat16)   # (H, tQ, hd_pad)

    # Output projection with per-head weight slabs (H, hd_pad, D): batched matmul over
    # heads + head-sum. No lane concatenate of per-head results is ever materialized.
    attn = jnp.einsum('hqd,hdn->hqn', o, w_proj_ref[...],
                      preferred_element_type=jnp.float32).sum(axis=0) + b_proj_ref[...]

    x = x + gate_msa * attn

    # ---- MLP branch ----
    h2 = (_layernorm(x) * (1.0 + scale_mlp) + shift_mlp).astype(jnp.bfloat16)
    z = jnp.dot(h2, w_fc1_ref[...], preferred_element_type=jnp.float32) + b_fc1_ref[...]
    z = _gelu_tanh(z).astype(jnp.bfloat16)
    z = jnp.dot(z, w_fc2_ref[...], preferred_element_type=jnp.float32) + b_fc2_ref[...]

    o_ref[0] = (x + gate_mlp * z).astype(o_ref.dtype)


# ---------------------------------------------------------------------------
# Host wrapper
# ---------------------------------------------------------------------------
def _round_up(v, m):
    return (v + m - 1) // m * m


def _token_tile(n, cap):
    for t in (cap, 256, 128, 64, 32, 16, 8):
        if t <= cap and n % t == 0:
            return t
    return n


def _vmem_limit_bytes():
    # ~85% of physical VMEM: ~108 MiB on v5e/v6e (128 MiB), ~54 MiB on v7x (64 MiB).
    try:
        cap = pltpu.get_tpu_info().vmem_capacity_bytes
        return min(int(cap * 0.85), 112 * 1024 * 1024)
    except Exception:
        return 64 * 1024 * 1024


def combo_stoc_block(x, c, params, num_heads):
    B, N, D = x.shape
    assert D % num_heads == 0
    H = num_heads
    hd = D // H
    hd_pad = _round_up(hd, 128)        # lane-aligned head_dim: no-copy head slicing, full MXU lanes
    Dh = params["w_fc1"].shape[1]

    tN = _token_tile(N, 128)           # token tile (pass-1 tile and pass-2 query tile)
    tK = _token_tile(N, 256)           # KV tile for the online-softmax loop

    f32, bf16 = jnp.float32, jnp.bfloat16

    # ---- host-side weight prep (in a real model, hoist/cache this once) ----
    w_ada = params["w_ada"]
    b_ada = params["b_ada"].astype(f32)
    w_ada_a = w_ada[:, :2 * D].astype(bf16)          # shift_msa, scale_msa
    b_ada_a = b_ada[:, :2 * D]
    w_ada_b = w_ada[:, 2 * D:].astype(bf16)          # gate_msa, shift_mlp, scale_mlp, gate_mlp
    b_ada_b = b_ada[:, 2 * D:]

    def head_pad_w(w):                                # (D, D) -> (D, H*hd_pad), zero-pad per head
        w = w.reshape(D, H, hd)
        w = jnp.pad(w, ((0, 0), (0, 0), (0, hd_pad - hd)))
        return w.reshape(D, H * hd_pad)

    def head_pad_b(b):                                # (1, D) -> (1, H*hd_pad)
        b = b.reshape(1, H, hd)
        b = jnp.pad(b, ((0, 0), (0, 0), (0, hd_pad - hd)))
        return b.reshape(1, H * hd_pad)

    scale = hd ** -0.5                                # fold softmax scale into the Q projection
    w_qkv = params["w_qkv"]
    b_qkv = params["b_qkv"].astype(f32)
    w_q = (head_pad_w(w_qkv[:, 0 * D:1 * D]) * scale).astype(bf16)
    w_k = head_pad_w(w_qkv[:, 1 * D:2 * D]).astype(bf16)
    w_v = head_pad_w(w_qkv[:, 2 * D:3 * D]).astype(bf16)
    b_q = head_pad_b(b_qkv[:, 0 * D:1 * D]) * scale
    b_k = head_pad_b(b_qkv[:, 1 * D:2 * D])
    b_v = head_pad_b(b_qkv[:, 2 * D:3 * D])

    # Output projection as per-head slabs (H, hd_pad, D); padded rows are zero.
    w_proj = params["w_proj"].reshape(H, hd, D)
    w_proj = jnp.pad(w_proj, ((0, 0), (0, hd_pad - hd), (0, 0))).astype(bf16)
    b_proj = params["b_proj"].astype(f32)

    w_fc1 = params["w_fc1"].astype(bf16)
    b_fc1 = params["b_fc1"].astype(f32)
    w_fc2 = params["w_fc2"].astype(bf16)
    b_fc2 = params["b_fc2"].astype(f32)

    vmem_limit = _vmem_limit_bytes()
    comp_params = pltpu.CompilerParams(
        dimension_semantics=("parallel", "parallel"),
        vmem_limit_bytes=vmem_limit,
    )

    def tok_spec():
        return pl.BlockSpec((1, tN, D), lambda b, t: (b, t, 0))

    def head_tok_spec():
        return pl.BlockSpec((1, H, tN, hd_pad), lambda b, t: (b, 0, t, 0))

    def kv_full_spec():
        return pl.BlockSpec((1, H, N, hd_pad), lambda b, t: (b, 0, 0, 0))

    def make_wspec(weight_mode):
        def wspec(shape):
            zeros = (0,) * len(shape)
            if weight_mode is None:
                return pl.BlockSpec(shape, lambda b, t: zeros)
            # Constant index_map -> weights never change across the grid; a second pipeline
            # buffer is pure VMEM waste, so request single buffering when supported.
            return pl.BlockSpec(shape, lambda b, t: zeros, pipeline_mode=weight_mode)
        return wspec

    kernel1 = functools.partial(_qkv_kernel, H, hd_pad)
    kernel2 = functools.partial(_attn_mlp_kernel, H, hd_pad, tK)

    def run_pass1(weight_mode):
        wspec = make_wspec(weight_mode)
        return pl.pallas_call(
            kernel1,
            out_shape=(
                jax.ShapeDtypeStruct((B, H, N, hd_pad), bf16),
                jax.ShapeDtypeStruct((B, H, N, hd_pad), bf16),
                jax.ShapeDtypeStruct((B, H, N, hd_pad), bf16),
            ),
            grid_spec=pltpu.PrefetchScalarGridSpec(
                num_scalar_prefetch=0,
                grid=(B, N // tN),
                in_specs=[
                    tok_spec(),               # x
                    tok_spec(),               # c
                    wspec((D, 2 * D)),        # w_ada (msa half)
                    wspec((1, 2 * D)),        # b_ada (msa half)
                    wspec((D, H * hd_pad)),   # w_q (scale folded)
                    wspec((1, H * hd_pad)),   # b_q
                    wspec((D, H * hd_pad)),   # w_k
                    wspec((1, H * hd_pad)),   # b_k
                    wspec((D, H * hd_pad)),   # w_v
                    wspec((1, H * hd_pad)),   # b_v
                ],
                out_specs=[head_tok_spec(), head_tok_spec(), head_tok_spec()],
            ),
            compiler_params=comp_params,
        )(x, c, w_ada_a, b_ada_a, w_q, b_q, w_k, b_k, w_v, b_v)

    def run_pass2(q, k, v, weight_mode):
        wspec = make_wspec(weight_mode)
        return pl.pallas_call(
            kernel2,
            out_shape=jax.ShapeDtypeStruct((B, N, D), x.dtype),
            grid_spec=pltpu.PrefetchScalarGridSpec(
                num_scalar_prefetch=0,
                grid=(B, N // tN),
                in_specs=[
                    tok_spec(),               # x (residual base)
                    tok_spec(),               # c (for mlp-half adaLN)
                    head_tok_spec(),          # q  (this query tile)
                    kv_full_spec(),           # k  (whole sequence, this batch)
                    kv_full_spec(),           # v
                    wspec((D, 4 * D)),        # w_ada (gate_msa + mlp half)
                    wspec((1, 4 * D)),        # b_ada
                    wspec((H, hd_pad, D)),    # w_proj per-head slabs
                    wspec((1, D)),            # b_proj
                    wspec((D, Dh)),           # w_fc1
                    wspec((1, Dh)),           # b_fc1
                    wspec((Dh, D)),           # w_fc2
                    wspec((1, D)),            # b_fc2
                ],
                out_specs=tok_spec(),
            ),
            compiler_params=comp_params,
        )(x, c, q, k, v, w_ada_b, b_ada_b, w_proj, b_proj, w_fc1, b_fc1, w_fc2, b_fc2)

    try:
        q, k, v = run_pass1(pl.Buffered(1))
    except Exception:
        q, k, v = run_pass1(None)        # fallback: default double buffering
    try:
        return run_pass2(q, k, v, pl.Buffered(1))
    except Exception:
        return run_pass2(q, k, v, None)


# ---------------------------------------------------------------------------
# Pure-JAX reference of the PyTorch forward (same weight convention) + self-test
# ---------------------------------------------------------------------------
def reference_block(x, c, params, num_heads):
    B, N, D = x.shape
    head_dim = D // num_heads
    mod = jax.nn.silu(c) @ params["w_ada"] + params["b_ada"][0]
    shift_msa, scale_msa, gate_msa, shift_mlp, scale_mlp, gate_mlp = jnp.split(mod, 6, axis=-1)

    def ln(z):
        mu = jnp.mean(z, -1, keepdims=True)
        var = jnp.mean((z - mu) ** 2, -1, keepdims=True)
        return (z - mu) / jnp.sqrt(var + 1e-6)

    h = ln(x) * (1 + scale_msa) + shift_msa
    qkv = h @ params["w_qkv"] + params["b_qkv"][0]
    q, k, v = jnp.split(qkv, 3, axis=-1)
    q = q.reshape(B, N, num_heads, head_dim).transpose(0, 2, 1, 3)
    k = k.reshape(B, N, num_heads, head_dim).transpose(0, 2, 1, 3)
    v = v.reshape(B, N, num_heads, head_dim).transpose(0, 2, 1, 3)
    s = (q @ k.transpose(0, 1, 3, 2)) * (head_dim ** -0.5)
    p = jax.nn.softmax(s, axis=-1)
    attn = (p @ v).transpose(0, 2, 1, 3).reshape(B, N, D)
    attn = attn @ params["w_proj"] + params["b_proj"][0]
    x = x + gate_msa * attn

    h2 = ln(x) * (1 + scale_mlp) + shift_mlp
    z = h2 @ params["w_fc1"] + params["b_fc1"][0]
    z = jax.nn.gelu(z, approximate=True)
    z = z @ params["w_fc2"] + params["b_fc2"][0]
    return x + gate_mlp * z


def init_params(key, hidden_size, mlp_ratio=4.0):
    D = hidden_size
    Dh = int(D * mlp_ratio)
    keys = jax.random.split(key, 12)
    sc = lambda fan_in: 1.0 / math.sqrt(fan_in)
    return {
        "w_ada": jax.random.normal(keys[0], (D, 6 * D), jnp.float32) * sc(D),
        "b_ada": jax.random.normal(keys[1], (1, 6 * D), jnp.float32) * 0.02,
        "w_qkv": jax.random.normal(keys[2], (D, 3 * D), jnp.float32) * sc(D),
        "b_qkv": jax.random.normal(keys[3], (1, 3 * D), jnp.float32) * 0.02,
        "w_proj": jax.random.normal(keys[4], (D, D), jnp.float32) * sc(D),
        "b_proj": jax.random.normal(keys[5], (1, D), jnp.float32) * 0.02,
        "w_fc1": jax.random.normal(keys[6], (D, Dh), jnp.float32) * sc(D),
        "b_fc1": jax.random.normal(keys[7], (1, Dh), jnp.float32) * 0.02,
        "w_fc2": jax.random.normal(keys[8], (Dh, D), jnp.float32) * sc(Dh),
        "b_fc2": jax.random.normal(keys[9], (1, D), jnp.float32) * 0.02,
    }


if __name__ == "__main__":
    B, N, D, HEADS = 2, 8, 32, 4
    key = jax.random.PRNGKey(0)
    kx, kc, kp = jax.random.split(key, 3)
    x = jax.random.normal(kx, (B, N, D), jnp.float32)
    c = jax.random.normal(kc, (B, N, D), jnp.float32)
    params = init_params(kp, D, mlp_ratio=4.0)

    out = combo_stoc_block(x, c, params, HEADS)
    out = jax.block_until_ready(out)

    # Kernel uses bf16 weights/operands on the MXU; compare against a reference with the
    # weights rounded through bf16 so the check isolates semantics from precision.
    params_bf = {k: v.astype(jnp.bfloat16).astype(jnp.float32) for k, v in params.items()}
    ref = reference_block(x, c, params_bf, HEADS)

    assert out.shape == (B, N, D)
    assert jnp.allclose(out, ref, rtol=5e-2, atol=5e-2), "mismatch vs JAX reference"
    print("KERNEL_OK")
</pallas_src>

<mosaic_0001>
module attributes {stable_mosaic.version = 11 : i64} {
  func.func @_qkv_kernel(%arg0: i32, %arg1: i32, %arg2: memref<1x8x32xf32, #tpu.memory_space<vmem>>, %arg3: memref<1x8x32xf32, #tpu.memory_space<vmem>>, %arg4: memref<32x64xbf16, #tpu.memory_space<vmem>>, %arg5: memref<1x64xf32, #tpu.memory_space<vmem>>, %arg6: memref<32x512xbf16, #tpu.memory_space<vmem>>, %arg7: memref<1x512xf32, #tpu.memory_space<vmem>>, %arg8: memref<32x512xbf16, #tpu.memory_space<vmem>>, %arg9: memref<1x512xf32, #tpu.memory_space<vmem>>, %arg10: memref<32x512xbf16, #tpu.memory_space<vmem>>, %arg11: memref<1x512xf32, #tpu.memory_space<vmem>>, %arg12: memref<1x4x8x128xbf16, #tpu.memory_space<vmem>>, %arg13: memref<1x4x8x128xbf16, #tpu.memory_space<vmem>>, %arg14: memref<1x4x8x128xbf16, #tpu.memory_space<vmem>>) attributes {dimension_semantics = [#tpu.dimension_semantics<parallel>, #tpu.dimension_semantics<parallel>], iteration_bounds = array<i64: 2, 1>, scalar_prefetch = 0 : i64, scratch_operands = 0 : i64, tpu.core_type = #tpu.core_type<tc>, window_params = [{transform_indices = @transform_0, window_bounds = array<i64: 1, 8, 32>}, {transform_indices = @transform_1, window_bounds = array<i64: 1, 8, 32>}, {pipeline_mode = #tpu.pipeline_mode<synchronous>, transform_indices = @transform_2, window_bounds = array<i64: 32, 64>}, {pipeline_mode = #tpu.pipeline_mode<synchronous>, transform_indices = @transform_3, window_bounds = array<i64: 1, 64>}, {pipeline_mode = #tpu.pipeline_mode<synchronous>, transform_indices = @transform_4, window_bounds = array<i64: 32, 512>}, {pipeline_mode = #tpu.pipeline_mode<synchronous>, transform_indices = @transform_5, window_bounds = array<i64: 1, 512>}, {pipeline_mode = #tpu.pipeline_mode<synchronous>, transform_indices = @transform_6, window_bounds = array<i64: 32, 512>}, {pipeline_mode = #tpu.pipeline_mode<synchronous>, transform_indices = @transform_7, window_bounds = array<i64: 1, 512>}, {pipeline_mode = #tpu.pipeline_mode<synchronous>, transform_indices = @transform_8, window_bounds = array<i64: 32, 512>}, {pipeline_mode = #tpu.pipeline_mode<synchronous>, transform_indices = @transform_9, window_bounds = array<i64: 1, 512>}, {transform_indices = @transform_10, window_bounds = array<i64: 1, 4, 8, 128>}, {transform_indices = @transform_11, window_bounds = array<i64: 1, 4, 8, 128>}, {transform_indices = @transform_12, window_bounds = array<i64: 1, 4, 8, 128>}]} {
    %c0 = arith.constant 0 : index
    %c0_0 = arith.constant 0 : index
    %c0_1 = arith.constant 0 : index
    %0 = vector.load %arg2[%c0, %c0_0, %c0_1] : memref<1x8x32xf32, #tpu.memory_space<vmem>>, vector<1x8x32xf32>
    %1 = vector.shape_cast %0 : vector<1x8x32xf32> to vector<8x32xf32>
    %c0_2 = arith.constant 0 : index
    %c0_3 = arith.constant 0 : index
    %c0_4 = arith.constant 0 : index
    %2 = vector.load %arg3[%c0_2, %c0_3, %c0_4] : memref<1x8x32xf32, #tpu.memory_space<vmem>>, vector<1x8x32xf32>
    %3 = vector.shape_cast %2 : vector<1x8x32xf32> to vector<8x32xf32>
    %4 = arith.negf %3 : vector<8x32xf32>
    %5 = math.exp %4 : vector<8x32xf32>
    %cst = arith.constant 1.000000e+00 : f32
    %6 = vector.broadcast %cst : f32 to vector<8x32xf32>
    %7 = arith.addf %6, %5 : vector<8x32xf32>
    %8 = arith.divf %6, %7 : vector<8x32xf32>
    %9 = arith.mulf %3, %8 : vector<8x32xf32>
    %10 = arith.truncf %9 : vector<8x32xf32> to vector<8x32xbf16>
    %c0_5 = arith.constant 0 : index
    %c0_6 = arith.constant 0 : index
    %11 = vector.load %arg4[%c0_5, %c0_6] : memref<32x64xbf16, #tpu.memory_space<vmem>>, vector<32x64xbf16>
    %cst_7 = arith.constant dense<0.000000e+00> : vector<8x64xf32>
    %12 = tpu.matmul %10, %11, %cst_7 {dimension_numbers = #tpu.dot_dimension_numbers<[1], [0], [0], [1], [0, 0, 1, 1], [], []>} : vector<8x32xbf16>, vector<32x64xbf16>, vector<8x64xf32> -> vector<8x64xf32>
    %c0_8 = arith.constant 0 : index
    %c0_9 = arith.constant 0 : index
    %13 = vector.load %arg5[%c0_8, %c0_9] : memref<1x64xf32, #tpu.memory_space<vmem>>, vector<1x64xf32>
    %14 = vector.broadcast %13 : vector<1x64xf32> to vector<8x64xf32>
    %15 = arith.addf %12, %14 : vector<8x64xf32>
    %16 = vector.extract_strided_slice %15 {offsets = [0, 0], sizes = [8, 32], strides = [1, 1]} : vector<8x64xf32> to vector<8x32xf32>
    %17 = vector.extract_strided_slice %15 {offsets = [0, 32], sizes = [8, 32], strides = [1, 1]} : vector<8x64xf32> to vector<8x32xf32>
    %cst_10 = arith.constant dense<0.000000e+00> : vector<8xf32>
    %18 = vector.multi_reduction <add>, %1, %cst_10 [1] : vector<8x32xf32> to vector<8xf32>
    %19 = vector.shape_cast %18 : vector<8xf32> to vector<8x1xf32>
    %cst_11 = arith.constant 3.200000e+01 : f32
    %20 = vector.broadcast %cst_11 : f32 to vector<8x1xf32>
    %21 = arith.divf %19, %20 : vector<8x1xf32>
    %22 = vector.broadcast %21 : vector<8x1xf32> to vector<8x32xf32>
    %23 = arith.subf %1, %22 : vector<8x32xf32>
    %24 = arith.mulf %23, %23 : vector<8x32xf32>
    %cst_12 = arith.constant dense<0.000000e+00> : vector<8xf32>
    %25 = vector.multi_reduction <add>, %24, %cst_12 [1] : vector<8x32xf32> to vector<8xf32>
    %26 = vector.shape_cast %25 : vector<8xf32> to vector<8x1xf32>
    %cst_13 = arith.constant 3.200000e+01 : f32
    %27 = vector.broadcast %cst_13 : f32 to vector<8x1xf32>
    %28 = arith.divf %26, %27 : vector<8x1xf32>
    %29 = vector.broadcast %21 : vector<8x1xf32> to vector<8x32xf32>
    %30 = arith.subf %1, %29 : vector<8x32xf32>
    %cst_14 = arith.constant 9.99999997E-7 : f32
    %31 = vector.broadcast %cst_14 : f32 to vector<8x1xf32>
    %32 = arith.addf %28, %31 : vector<8x1xf32>
    %33 = math.rsqrt %32 : vector<8x1xf32>
    %34 = vector.broadcast %33 : vector<8x1xf32> to vector<8x32xf32>
    %35 = arith.mulf %30, %34 : vector<8x32xf32>
    %cst_15 = arith.constant 1.000000e+00 : f32
    %36 = vector.broadcast %cst_15 : f32 to vector<8x32xf32>
    %37 = arith.addf %36, %17 : vector<8x32xf32>
    %38 = arith.mulf %35, %37 : vector<8x32xf32>
    %39 = arith.addf %38, %16 : vector<8x32xf32>
    %40 = arith.truncf %39 : vector<8x32xf32> to vector<8x32xbf16>
    %c0_16 = arith.constant 0 : index
    %c0_17 = arith.constant 0 : index
    %41 = vector.load %arg6[%c0_16, %c0_17] : memref<32x512xbf16, #tpu.memory_space<vmem>>, vector<32x512xbf16>
    %cst_18 = arith.constant dense<0.000000e+00> : vector<8x512xf32>
    %42 = tpu.matmul %40, %41, %cst_18 {dimension_numbers = #tpu.dot_dimension_numbers<[1], [0], [0], [1], [0, 0, 1, 1], [], []>} : vector<8x32xbf16>, vector<32x512xbf16>, vector<8x512xf32> -> vector<8x512xf32>
    %c0_19 = arith.constant 0 : index
    %c0_20 = arith.constant 0 : index
    %43 = vector.load %arg7[%c0_19, %c0_20] : memref<1x512xf32, #tpu.memory_space<vmem>>, vector<1x512xf32>
    %44 = vector.broadcast %43 : vector<1x512xf32> to vector<8x512xf32>
    %45 = arith.addf %42, %44 : vector<8x512xf32>
    %46 = vector.extract_strided_slice %45 {offsets = [0, 0], sizes = [8, 128], strides = [1, 1]} : vector<8x512xf32> to vector<8x128xf32>
    %47 = arith.truncf %46 : vector<8x128xf32> to vector<8x128xbf16>
    %c0_21 = arith.constant 0 : index
    %c0_22 = arith.constant 0 : index
    %c0_23 = arith.constant 0 : index
    %c0_24 = arith.constant 0 : index
    %48 = vector.load %arg12[%c0_21, %c0_22, %c0_23, %c0_24] : memref<1x4x8x128xbf16, #tpu.memory_space<vmem>>, vector<1x1x8x128xbf16>
    %49 = vector.shape_cast %48 : vector<1x1x8x128xbf16> to vector<8x128xbf16>
    %50 = vector.shape_cast %47 : vector<8x128xbf16> to vector<1x1x8x128xbf16>
    tpu.vector_store %arg12[%c0_21, %c0_22, %c0_23, %c0_24], %50 {strides = array<i32>} : memref<1x4x8x128xbf16, #tpu.memory_space<vmem>>, vector<1x1x8x128xbf16>,
    %51 = vector.extract_strided_slice %45 {offsets = [0, 128], sizes = [8, 128], strides = [1, 1]} : vector<8x512xf32> to vector<8x128xf32>
    %52 = arith.truncf %51 : vector<8x128xf32> to vector<8x128xbf16>
    %c0_25 = arith.constant 0 : index
    %c1 = arith.constant 1 : index
    %c0_26 = arith.constant 0 : index
    %c0_27 = arith.constant 0 : index
    %53 = vector.load %arg12[%c0_25, %c1, %c0_26, %c0_27] : memref<1x4x8x128xbf16, #tpu.memory_space<vmem>>, vector<1x1x8x128xbf16>
    %54 = vector.shape_cast %53 : vector<1x1x8x128xbf16> to vector<8x128xbf16>
    %55 = vector.shape_cast %52 : vector<8x128xbf16> to vector<1x1x8x128xbf16>
    tpu.vector_store %arg12[%c0_25, %c1, %c0_26, %c0_27], %55 {strides = array<i32>} : memref<1x4x8x128xbf16, #tpu.memory_space<vmem>>, vector<1x1x8x128xbf16>,
    %56 = vector.extract_strided_slice %45 {offsets = [0, 256], sizes = [8, 128], strides = [1, 1]} : vector<8x512xf32> to vector<8x128xf32>
    %57 = arith.truncf %56 : vector<8x128xf32> to vector<8x128xbf16>
    %c0_28 = arith.constant 0 : index
    %c2 = arith.constant 2 : index
    %c0_29 = arith.constant 0 : index
    %c0_30 = arith.constant 0 : index
    %58 = vector.load %arg12[%c0_28, %c2, %c0_29, %c0_30] : memref<1x4x8x128xbf16, #tpu.memory_space<vmem>>, vector<1x1x8x128xbf16>
    %59 = vector.shape_cast %58 : vector<1x1x8x128xbf16> to vector<8x128xbf16>
    %60 = vector.shape_cast %57 : vector<8x128xbf16> to vector<1x1x8x128xbf16>
    tpu.vector_store %arg12[%c0_28, %c2, %c0_29, %c0_30], %60 {strides = array<i32>} : memref<1x4x8x128xbf16, #tpu.memory_space<vmem>>, vector<1x1x8x128xbf16>,
    %61 = vector.extract_strided_slice %45 {offsets = [0, 384], sizes = [8, 128], strides = [1, 1]} : vector<8x512xf32> to vector<8x128xf32>
    %62 = arith.truncf %61 : vector<8x128xf32> to vector<8x128xbf16>
    %c0_31 = arith.constant 0 : index
    %c3 = arith.constant 3 : index
    %c0_32 = arith.constant 0 : index
    %c0_33 = arith.constant 0 : index
    %63 = vector.load %arg12[%c0_31, %c3, %c0_32, %c0_33] : memref<1x4x8x128xbf16, #tpu.memory_space<vmem>>, vector<1x1x8x128xbf16>
    %64 = vector.shape_cast %63 : vector<1x1x8x128xbf16> to vector<8x128xbf16>
    %65 = vector.shape_cast %62 : vector<8x128xbf16> to vector<1x1x8x128xbf16>
    tpu.vector_store %arg12[%c0_31, %c3, %c0_32, %c0_33], %65 {strides = array<i32>} : memref<1x4x8x128xbf16, #tpu.memory_space<vmem>>, vector<1x1x8x128xbf16>,
    %c0_34 = arith.constant 0 : index
    %c0_35 = arith.constant 0 : index
    %66 = vector.load %arg8[%c0_34, %c0_35] : memref<32x512xbf16, #tpu.memory_space<vmem>>, vector<32x512xbf16>
    %cst_36 = arith.constant dense<0.000000e+00> : vector<8x512xf32>
    %67 = tpu.matmul %40, %66, %cst_36 {dimension_numbers = #tpu.dot_dimension_numbers<[1], [0], [0], [1], [0, 0, 1, 1], [], []>} : vector<8x32xbf16>, vector<32x512xbf16>, vector<8x512xf32> -> vector<8x512xf32>
    %c0_37 = arith.constant 0 : index
    %c0_38 = arith.constant 0 : index
    %68 = vector.load %arg9[%c0_37, %c0_38] : memref<1x512xf32, #tpu.memory_space<vmem>>, vector<1x512xf32>
    %69 = vector.broadcast %68 : vector<1x512xf32> to vector<8x512xf32>
    %70 = arith.addf %67, %69 : vector<8x512xf32>
    %71 = vector.extract_strided_slice %70 {offsets = [0, 0], sizes = [8, 128], strides = [1, 1]} : vector<8x512xf32> to vector<8x128xf32>
    %72 = arith.truncf %71 : vector<8x128xf32> to vector<8x128xbf16>
    %c0_39 = arith.constant 0 : index
    %c0_40 = arith.constant 0 : index
    %c0_41 = arith.constant 0 : index
    %c0_42 = arith.constant 0 : index
    %73 = vector.load %arg13[%c0_39, %c0_40, %c0_41, %c0_42] : memref<1x4x8x128xbf16, #tpu.memory_space<vmem>>, vector<1x1x8x128xbf16>
    %74 = vector.shape_cast %73 : vector<1x1x8x128xbf16> to vector<8x128xbf16>
    %75 = vector.shape_cast %72 : vector<8x128xbf16> to vector<1x1x8x128xbf16>
    tpu.vector_store %arg13[%c0_39, %c0_40, %c0_41, %c0_42], %75 {strides = array<i32>} : memref<1x4x8x128xbf16, #tpu.memory_space<vmem>>, vector<1x1x8x128xbf16>,
    %76 = vector.extract_strided_slice %70 {offsets = [0, 128], sizes = [8, 128], strides = [1, 1]} : vector<8x512xf32> to vector<8x128xf32>
    %77 = arith.truncf %76 : vector<8x128xf32> to vector<8x128xbf16>
    %c0_43 = arith.constant 0 : index
    %c1_44 = arith.constant 1 : index
    %c0_45 = arith.constant 0 : index
    %c0_46 = arith.constant 0 : index
    %78 = vector.load %arg13[%c0_43, %c1_44, %c0_45, %c0_46] : memref<1x4x8x128xbf16, #tpu.memory_space<vmem>>, vector<1x1x8x128xbf16>
    %79 = vector.shape_cast %78 : vector<1x1x8x128xbf16> to vector<8x128xbf16>
    %80 = vector.shape_cast %77 : vector<8x128xbf16> to vector<1x1x8x128xbf16>
    tpu.vector_store %arg13[%c0_43, %c1_44, %c0_45, %c0_46], %80 {strides = array<i32>} : memref<1x4x8x128xbf16, #tpu.memory_space<vmem>>, vector<1x1x8x128xbf16>,
    %81 = vector.extract_strided_slice %70 {offsets = [0, 256], sizes = [8, 128], strides = [1, 1]} : vector<8x512xf32> to vector<8x128xf32>
    %82 = arith.truncf %81 : vector<8x128xf32> to vector<8x128xbf16>
    %c0_47 = arith.constant 0 : index
    %c2_48 = arith.constant 2 : index
    %c0_49 = arith.constant 0 : index
    %c0_50 = arith.constant 0 : index
    %83 = vector.load %arg13[%c0_47, %c2_48, %c0_49, %c0_50] : memref<1x4x8x128xbf16, #tpu.memory_space<vmem>>, vector<1x1x8x128xbf16>
    %84 = vector.shape_cast %83 : vector<1x1x8x128xbf16> to vector<8x128xbf16>
    %85 = vector.shape_cast %82 : vector<8x128xbf16> to vector<1x1x8x128xbf16>
    tpu.vector_store %arg13[%c0_47, %c2_48, %c0_49, %c0_50], %85 {strides = array<i32>} : memref<1x4x8x128xbf16, #tpu.memory_space<vmem>>, vector<1x1x8x128xbf16>,
    %86 = vector.extract_strided_slice %70 {offsets = [0, 384], sizes = [8, 128], strides = [1, 1]} : vector<8x512xf32> to vector<8x128xf32>
    %87 = arith.truncf %86 : vector<8x128xf32> to vector<8x128xbf16>
    %c0_51 = arith.constant 0 : index
    %c3_52 = arith.constant 3 : index
    %c0_53 = arith.constant 0 : index
    %c0_54 = arith.constant 0 : index
    %88 = vector.load %arg13[%c0_51, %c3_52, %c0_53, %c0_54] : memref<1x4x8x128xbf16, #tpu.memory_space<vmem>>, vector<1x1x8x128xbf16>
    %89 = vector.shape_cast %88 : vector<1x1x8x128xbf16> to vector<8x128xbf16>
    %90 = vector.shape_cast %87 : vector<8x128xbf16> to vector<1x1x8x128xbf16>
    tpu.vector_store %arg13[%c0_51, %c3_52, %c0_53, %c0_54], %90 {strides = array<i32>} : memref<1x4x8x128xbf16, #tpu.memory_space<vmem>>, vector<1x1x8x128xbf16>,
    %c0_55 = arith.constant 0 : index
    %c0_56 = arith.constant 0 : index
    %91 = vector.load %arg10[%c0_55, %c0_56] : memref<32x512xbf16, #tpu.memory_space<vmem>>, vector<32x512xbf16>
    %cst_57 = arith.constant dense<0.000000e+00> : vector<8x512xf32>
    %92 = tpu.matmul %40, %91, %cst_57 {dimension_numbers = #tpu.dot_dimension_numbers<[1], [0], [0], [1], [0, 0, 1, 1], [], []>} : vector<8x32xbf16>, vector<32x512xbf16>, vector<8x512xf32> -> vector<8x512xf32>
    %c0_58 = arith.constant 0 : index
    %c0_59 = arith.constant 0 : index
    %93 = vector.load %arg11[%c0_58, %c0_59] : memref<1x512xf32, #tpu.memory_space<vmem>>, vector<1x512xf32>
    %94 = vector.broadcast %93 : vector<1x512xf32> to vector<8x512xf32>
    %95 = arith.addf %92, %94 : vector<8x512xf32>
    %96 = vector.extract_strided_slice %95 {offsets = [0, 0], sizes = [8, 128], strides = [1, 1]} : vector<8x512xf32> to vector<8x128xf32>
    %97 = arith.truncf %96 : vector<8x128xf32> to vector<8x128xbf16>
    %c0_60 = arith.constant 0 : index
    %c0_61 = arith.constant 0 : index
    %c0_62 = arith.constant 0 : index
    %c0_63 = arith.constant 0 : index
    %98 = vector.load %arg14[%c0_60, %c0_61, %c0_62, %c0_63] : memref<1x4x8x128xbf16, #tpu.memory_space<vmem>>, vector<1x1x8x128xbf16>
    %99 = vector.shape_cast %98 : vector<1x1x8x128xbf16> to vector<8x128xbf16>
    %100 = vector.shape_cast %97 : vector<8x128xbf16> to vector<1x1x8x128xbf16>
    tpu.vector_store %arg14[%c0_60, %c0_61, %c0_62, %c0_63], %100 {strides = array<i32>} : memref<1x4x8x128xbf16, #tpu.memory_space<vmem>>, vector<1x1x8x128xbf16>,
    %101 = vector.extract_strided_slice %95 {offsets = [0, 128], sizes = [8, 128], strides = [1, 1]} : vector<8x512xf32> to vector<8x128xf32>
    %102 = arith.truncf %101 : vector<8x128xf32> to vector<8x128xbf16>
    %c0_64 = arith.constant 0 : index
    %c1_65 = arith.constant 1 : index
    %c0_66 = arith.constant 0 : index
    %c0_67 = arith.constant 0 : index
    %103 = vector.load %arg14[%c0_64, %c1_65, %c0_66, %c0_67] : memref<1x4x8x128xbf16, #tpu.memory_space<vmem>>, vector<1x1x8x128xbf16>
    %104 = vector.shape_cast %103 : vector<1x1x8x128xbf16> to vector<8x128xbf16>
    %105 = vector.shape_cast %102 : vector<8x128xbf16> to vector<1x1x8x128xbf16>
    tpu.vector_store %arg14[%c0_64, %c1_65, %c0_66, %c0_67], %105 {strides = array<i32>} : memref<1x4x8x128xbf16, #tpu.memory_space<vmem>>, vector<1x1x8x128xbf16>,
    %106 = vector.extract_strided_slice %95 {offsets = [0, 256], sizes = [8, 128], strides = [1, 1]} : vector<8x512xf32> to vector<8x128xf32>
    %107 = arith.truncf %106 : vector<8x128xf32> to vector<8x128xbf16>
    %c0_68 = arith.constant 0 : index
    %c2_69 = arith.constant 2 : index
    %c0_70 = arith.constant 0 : index
    %c0_71 = arith.constant 0 : index
    %108 = vector.load %arg14[%c0_68, %c2_69, %c0_70, %c0_71] : memref<1x4x8x128xbf16, #tpu.memory_space<vmem>>, vector<1x1x8x128xbf16>
    %109 = vector.shape_cast %108 : vector<1x1x8x128xbf16> to vector<8x128xbf16>
    %110 = vector.shape_cast %107 : vector<8x128xbf16> to vector<1x1x8x128xbf16>
    tpu.vector_store %arg14[%c0_68, %c2_69, %c0_70, %c0_71], %110 {strides = array<i32>} : memref<1x4x8x128xbf16, #tpu.memory_space<vmem>>, vector<1x1x8x128xbf16>,
    %111 = vector.extract_strided_slice %95 {offsets = [0, 384], sizes = [8, 128], strides = [1, 1]} : vector<8x512xf32> to vector<8x128xf32>
    %112 = arith.truncf %111 : vector<8x128xf32> to vector<8x128xbf16>
    %c0_72 = arith.constant 0 : index
    %c3_73 = arith.constant 3 : index
    %c0_74 = arith.constant 0 : index
    %c0_75 = arith.constant 0 : index
    %113 = vector.load %arg14[%c0_72, %c3_73, %c0_74, %c0_75] : memref<1x4x8x128xbf16, #tpu.memory_space<vmem>>, vector<1x1x8x128xbf16>
    %114 = vector.shape_cast %113 : vector<1x1x8x128xbf16> to vector<8x128xbf16>
    %115 = vector.shape_cast %112 : vector<8x128xbf16> to vector<1x1x8x128xbf16>
    tpu.vector_store %arg14[%c0_72, %c3_73, %c0_74, %c0_75], %115 {strides = array<i32>} : memref<1x4x8x128xbf16, #tpu.memory_space<vmem>>, vector<1x1x8x128xbf16>,
    return
  }
  func.func @transform_0(%arg0: i32, %arg1: i32) -> (i32, i32, i32) {
    %c0_i32 = arith.constant 0 : i32
    %c0_i32_0 = arith.constant 0 : i32
    return %arg0, %arg1, %c0_i32 : i32, i32, i32
  }
  func.func @transform_1(%arg0: i32, %arg1: i32) -> (i32, i32, i32) {
    %c0_i32 = arith.constant 0 : i32
    %c0_i32_0 = arith.constant 0 : i32
    return %arg0, %arg1, %c0_i32 : i32, i32, i32
  }
  func.func @transform_2(%arg0: i32, %arg1: i32) -> (i32, i32) {
    %c0_i32 = arith.constant 0 : i32
    %c0_i32_0 = arith.constant 0 : i32
    %c0_i32_1 = arith.constant 0 : i32
    return %c0_i32, %c0_i32_0 : i32, i32
  }
  func.func @transform_3(%arg0: i32, %arg1: i32) -> (i32, i32) {
    %c0_i32 = arith.constant 0 : i32
    %c0_i32_0 = arith.constant 0 : i32
    %c0_i32_1 = arith.constant 0 : i32
    return %c0_i32, %c0_i32_0 : i32, i32
  }
  func.func @transform_4(%arg0: i32, %arg1: i32) -> (i32, i32) {
    %c0_i32 = arith.constant 0 : i32
    %c0_i32_0 = arith.constant 0 : i32
    %c0_i32_1 = arith.constant 0 : i32
    return %c0_i32, %c0_i32_0 : i32, i32
  }
  func.func @transform_5(%arg0: i32, %arg1: i32) -> (i32, i32) {
    %c0_i32 = arith.constant 0 : i32
    %c0_i32_0 = arith.constant 0 : i32
    %c0_i32_1 = arith.constant 0 : i32
    return %c0_i32, %c0_i32_0 : i32, i32
  }
  func.func @transform_6(%arg0: i32, %arg1: i32) -> (i32, i32) {
    %c0_i32 = arith.constant 0 : i32
    %c0_i32_0 = arith.constant 0 : i32
    %c0_i32_1 = arith.constant 0 : i32
    return %c0_i32, %c0_i32_0 : i32, i32
  }
  func.func @transform_7(%arg0: i32, %arg1: i32) -> (i32, i32) {
    %c0_i32 = arith.constant 0 : i32
    %c0_i32_0 = arith.constant 0 : i32
    %c0_i32_1 = arith.constant 0 : i32
    return %c0_i32, %c0_i32_0 : i32, i32
  }
  func.func @transform_8(%arg0: i32, %arg1: i32) -> (i32, i32) {
    %c0_i32 = arith.constant 0 : i32
    %c0_i32_0 = arith.constant 0 : i32
    %c0_i32_1 = arith.constant 0 : i32
    return %c0_i32, %c0_i32_0 : i32, i32
  }
  func.func @transform_9(%arg0: i32, %arg1: i32) -> (i32, i32) {
    %c0_i32 = arith.constant 0 : i32
    %c0_i32_0 = arith.constant 0 : i32
    %c0_i32_1 = arith.constant 0 : i32
    return %c0_i32, %c0_i32_0 : i32, i32
  }
  func.func @transform_10(%arg0: i32, %arg1: i32) -> (i32, i32, i32, i32) {
    %c0_i32 = arith.constant 0 : i32
    %c0_i32_0 = arith.constant 0 : i32
    %c0_i32_1 = arith.constant 0 : i32
    return %arg0, %c0_i32, %arg1, %c0_i32_0 : i32, i32, i32, i32
  }
  func.func @transform_11(%arg0: i32, %arg1: i32) -> (i32, i32, i32, i32) {
    %c0_i32 = arith.constant 0 : i32
    %c0_i32_0 = arith.constant 0 : i32
    %c0_i32_1 = arith.constant 0 : i32
    return %arg0, %c0_i32, %arg1, %c0_i32_0 : i32, i32, i32, i32
  }
  func.func @transform_12(%arg0: i32, %arg1: i32) -> (i32, i32, i32, i32) {
    %c0_i32 = arith.constant 0 : i32
    %c0_i32_0 = arith.constant 0 : i32
    %c0_i32_1 = arith.constant 0 : i32
    return %arg0, %c0_i32, %arg1, %c0_i32_0 : i32, i32, i32, i32
  }
}

module attributes {stable_mosaic.version = 11 : i64} {
  func.func @_qkv_kernel(%arg0: i32, %arg1: i32, %arg2: memref<1x8x32xf32, #tpu.memory_space<vmem>>, %arg3: memref<1x8x32xf32, #tpu.memory_space<vmem>>, %arg4: memref<32x64xbf16, #tpu.memory_space<vmem>>, %arg5: memref<1x64xf32, #tpu.memory_space<vmem>>, %arg6: memref<32x512xbf16, #tpu.memory_space<vmem>>, %arg7: memref<1x512xf32, #tpu.memory_space<vmem>>, %arg8: memref<32x512xbf16, #tpu.memory_space<vmem>>, %arg9: memref<1x512xf32, #tpu.memory_space<vmem>>, %arg10: memref<32x512xbf16, #tpu.memory_space<vmem>>, %arg11: memref<1x512xf32, #tpu.memory_space<vmem>>, %arg12: memref<1x4x8x128xbf16, #tpu.memory_space<vmem>>, %arg13: memref<1x4x8x128xbf16, #tpu.memory_space<vmem>>, %arg14: memref<1x4x8x128xbf16, #tpu.memory_space<vmem>>) attributes {dimension_semantics = [#tpu.dimension_semantics<parallel>, #tpu.dimension_semantics<parallel>], iteration_bounds = array<i64: 2, 1>, scalar_prefetch = 0 : i64, scratch_operands = 0 : i64, tpu.core_type = #tpu.core_type<tc>, window_params = [{transform_indices = @transform_0, window_bounds = array<i64: 1, 8, 32>}, {transform_indices = @transform_1, window_bounds = array<i64: 1, 8, 32>}, {pipeline_mode = #tpu.pipeline_mode<synchronous>, transform_indices = @transform_2, window_bounds = array<i64: 32, 64>}, {pipeline_mode = #tpu.pipeline_mode<synchronous>, transform_indices = @transform_3, window_bounds = array<i64: 1, 64>}, {pipeline_mode = #tpu.pipeline_mode<synchronous>, transform_indices = @transform_4, window_bounds = array<i64: 32, 512>}, {pipeline_mode = #tpu.pipeline_mode<synchronous>, transform_indices = @transform_5, window_bounds = array<i64: 1, 512>}, {pipeline_mode = #tpu.pipeline_mode<synchronous>, transform_indices = @transform_6, window_bounds = array<i64: 32, 512>}, {pipeline_mode = #tpu.pipeline_mode<synchronous>, transform_indices = @transform_7, window_bounds = array<i64: 1, 512>}, {pipeline_mode = #tpu.pipeline_mode<synchronous>, transform_indices = @transform_8, window_bounds = array<i64: 32, 512>}, {pipeline_mode = #tpu.pipeline_mode<synchronous>, transform_indices = @transform_9, window_bounds = array<i64: 1, 512>}, {transform_indices = @transform_10, window_bounds = array<i64: 1, 4, 8, 128>}, {transform_indices = @transform_11, window_bounds = array<i64: 1, 4, 8, 128>}, {transform_indices = @transform_12, window_bounds = array<i64: 1, 4, 8, 128>}]} {
    %c0 = arith.constant 0 : index
    %c0_0 = arith.constant 0 : index
    %c0_1 = arith.constant 0 : index
    %0 = vector.load %arg2[%c0, %c0_0, %c0_1] : memref<1x8x32xf32, #tpu.memory_space<vmem>>, vector<1x8x32xf32>
    %1 = vector.shape_cast %0 : vector<1x8x32xf32> to vector<8x32xf32>
    %c0_2 = arith.constant 0 : index
    %c0_3 = arith.constant 0 : index
    %c0_4 = arith.constant 0 : index
    %2 = vector.load %arg3[%c0_2, %c0_3, %c0_4] : memref<1x8x32xf32, #tpu.memory_space<vmem>>, vector<1x8x32xf32>
    %3 = vector.shape_cast %2 : vector<1x8x32xf32> to vector<8x32xf32>
    %4 = arith.negf %3 : vector<8x32xf32>
    %5 = math.exp %4 : vector<8x32xf32>
    %cst = arith.constant 1.000000e+00 : f32
    %6 = vector.broadcast %cst : f32 to vector<8x32xf32>
    %7 = arith.addf %6, %5 : vector<8x32xf32>
    %8 = arith.divf %6, %7 : vector<8x32xf32>
    %9 = arith.mulf %3, %8 : vector<8x32xf32>
    %10 = arith.truncf %9 : vector<8x32xf32> to vector<8x32xbf16>
    %c0_5 = arith.constant 0 : index
    %c0_6 = arith.constant 0 : index
    %11 = vector.load %arg4[%c0_5, %c0_6] : memref<32x64xbf16, #tpu.memory_space<vmem>>, vector<32x64xbf16>
    %cst_7 = arith.constant dense<0.000000e+00> : vector<8x64xf32>
    %12 = tpu.matmul %10, %11, %cst_7 {dimension_numbers = #tpu.dot_dimension_numbers<[1], [0], [0], [1], [0, 0, 1, 1], [], []>} : vector<8x32xbf16>, vector<32x64xbf16>, vector<8x64xf32> -> vector<8x64xf32>
    %c0_8 = arith.constant 0 : index
    %c0_9 = arith.constant 0 : index
    %13 = vector.load %arg5[%c0_8, %c0_9] : memref<1x64xf32, #tpu.memory_space<vmem>>, vector<1x64xf32>
    %14 = vector.broadcast %13 : vector<1x64xf32> to vector<8x64xf32>
    %15 = arith.addf %12, %14 : vector<8x64xf32>
    %16 = vector.extract_strided_slice %15 {offsets = [0, 0], sizes = [8, 32], strides = [1, 1]} : vector<8x64xf32> to vector<8x32xf32>
    %17 = vector.extract_strided_slice %15 {offsets = [0, 32], sizes = [8, 32], strides = [1, 1]} : vector<8x64xf32> to vector<8x32xf32>
    %cst_10 = arith.constant dense<0.000000e+00> : vector<8xf32>
    %18 = vector.multi_reduction <add>, %1, %cst_10 [1] : vector<8x32xf32> to vector<8xf32>
    %19 = vector.shape_cast %18 : vector<8xf32> to vector<8x1xf32>
    %cst_11 = arith.constant 3.200000e+01 : f32
    %20 = vector.broadcast %cst_11 : f32 to vector<8x1xf32>
    %21 = arith.divf %19, %20 : vector<8x1xf32>
    %22 = vector.broadcast %21 : vector<8x1xf32> to vector<8x32xf32>
    %23 = arith.subf %1, %22 : vector<8x32xf32>
    %24 = arith.mulf %23, %23 : vector<8x32xf32>
    %cst_12 = arith.constant dense<0.000000e+00> : vector<8xf32>
    %25 = vector.multi_reduction <add>, %24, %cst_12 [1] : vector<8x32xf32> to vector<8xf32>
    %26 = vector.shape_cast %25 : vector<8xf32> to vector<8x1xf32>
    %cst_13 = arith.constant 3.200000e+01 : f32
    %27 = vector.broadcast %cst_13 : f32 to vector<8x1xf32>
    %28 = arith.divf %26, %27 : vector<8x1xf32>
    %29 = vector.broadcast %21 : vector<8x1xf32> to vector<8x32xf32>
    %30 = arith.subf %1, %29 : vector<8x32xf32>
    %cst_14 = arith.constant 9.99999997E-7 : f32
    %31 = vector.broadcast %cst_14 : f32 to vector<8x1xf32>
    %32 = arith.addf %28, %31 : vector<8x1xf32>
    %33 = math.rsqrt %32 : vector<8x1xf32>
    %34 = vector.broadcast %33 : vector<8x1xf32> to vector<8x32xf32>
    %35 = arith.mulf %30, %34 : vector<8x32xf32>
    %cst_15 = arith.constant 1.000000e+00 : f32
    %36 = vector.broadcast %cst_15 : f32 to vector<8x32xf32>
    %37 = arith.addf %36, %17 : vector<8x32xf32>
    %38 = arith.mulf %35, %37 : vector<8x32xf32>
    %39 = arith.addf %38, %16 : vector<8x32xf32>
    %40 = arith.truncf %39 : vector<8x32xf32> to vector<8x32xbf16>
    %c0_16 = arith.constant 0 : index
    %c0_17 = arith.constant 0 : index
    %41 = vector.load %arg6[%c0_16, %c0_17] : memref<32x512xbf16, #tpu.memory_space<vmem>>, vector<32x512xbf16>
    %cst_18 = arith.constant dense<0.000000e+00> : vector<8x512xf32>
    %42 = tpu.matmul %40, %41, %cst_18 {dimension_numbers = #tpu.dot_dimension_numbers<[1], [0], [0], [1], [0, 0, 1, 1], [], []>} : vector<8x32xbf16>, vector<32x512xbf16>, vector<8x512xf32> -> vector<8x512xf32>
    %c0_19 = arith.constant 0 : index
    %c0_20 = arith.constant 0 : index
    %43 = vector.load %arg7[%c0_19, %c0_20] : memref<1x512xf32, #tpu.memory_space<vmem>>, vector<1x512xf32>
    %44 = vector.broadcast %43 : vector<1x512xf32> to vector<8x512xf32>
    %45 = arith.addf %42, %44 : vector<8x512xf32>
    %46 = vector.extract_strided_slice %45 {offsets = [0, 0], sizes = [8, 128], strides = [1, 1]} : vector<8x512xf32> to vector<8x128xf32>
    %47 = arith.truncf %46 : vector<8x128xf32> to vector<8x128xbf16>
    %c0_21 = arith.constant 0 : index
    %c0_22 = arith.constant 0 : index
    %c0_23 = arith.constant 0 : index
    %c0_24 = arith.constant 0 : index
    %48 = vector.load %arg12[%c0_21, %c0_22, %c0_23, %c0_24] : memref<1x4x8x128xbf16, #tpu.memory_space<vmem>>, vector<1x1x8x128xbf16>
    %49 = vector.shape_cast %48 : vector<1x1x8x128xbf16> to vector<8x128xbf16>
    %50 = vector.shape_cast %47 : vector<8x128xbf16> to vector<1x1x8x128xbf16>
    tpu.vector_store %arg12[%c0_21, %c0_22, %c0_23, %c0_24], %50 {strides = array<i32>} : memref<1x4x8x128xbf16, #tpu.memory_space<vmem>>, vector<1x1x8x128xbf16>,
    %51 = vector.extract_strided_slice %45 {offsets = [0, 128], sizes = [8, 128], strides = [1, 1]} : vector<8x512xf32> to vector<8x128xf32>
    %52 = arith.truncf %51 : vector<8x128xf32> to vector<8x128xbf16>
    %c0_25 = arith.constant 0 : index
    %c1 = arith.constant 1 : index
    %c0_26 = arith.constant 0 : index
    %c0_27 = arith.constant 0 : index
    %53 = vector.load %arg12[%c0_25, %c1, %c0_26, %c0_27] : memref<1x4x8x128xbf16, #tpu.memory_space<vmem>>, vector<1x1x8x128xbf16>
    %54 = vector.shape_cast %53 : vector<1x1x8x128xbf16> to vector<8x128xbf16>
    %55 = vector.shape_cast %52 : vector<8x128xbf16> to vector<1x1x8x128xbf16>
    tpu.vector_store %arg12[%c0_25, %c1, %c0_26, %c0_27], %55 {strides = array<i32>} : memref<1x4x8x128xbf16, #tpu.memory_space<vmem>>, vector<1x1x8x128xbf16>,
    %56 = vector.extract_strided_slice %45 {offsets = [0, 256], sizes = [8, 128], strides = [1, 1]} : vector<8x512xf32> to vector<8x128xf32>
    %57 = arith.truncf %56 : vector<8x128xf32> to vector<8x128xbf16>
    %c0_28 = arith.constant 0 : index
    %c2 = arith.constant 2 : index
    %c0_29 = arith.constant 0 : index
    %c0_30 = arith.constant 0 : index
    %58 = vector.load %arg12[%c0_28, %c2, %c0_29, %c0_30] : memref<1x4x8x128xbf16, #tpu.memory_space<vmem>>, vector<1x1x8x128xbf16>
    %59 = vector.shape_cast %58 : vector<1x1x8x128xbf16> to vector<8x128xbf16>
    %60 = vector.shape_cast %57 : vector<8x128xbf16> to vector<1x1x8x128xbf16>
    tpu.vector_store %arg12[%c0_28, %c2, %c0_29, %c0_30], %60 {strides = array<i32>} : memref<1x4x8x128xbf16, #tpu.memory_space<vmem>>, vector<1x1x8x128xbf16>,
    %61 = vector.extract_strided_slice %45 {offsets = [0, 384], sizes = [8, 128], strides = [1, 1]} : vector<8x512xf32> to vector<8x128xf32>
    %62 = arith.truncf %61 : vector<8x128xf32> to vector<8x128xbf16>
    %c0_31 = arith.constant 0 : index
    %c3 = arith.constant 3 : index
    %c0_32 = arith.constant 0 : index
    %c0_33 = arith.constant 0 : index
    %63 = vector.load %arg12[%c0_31, %c3, %c0_32, %c0_33] : memref<1x4x8x128xbf16, #tpu.memory_space<vmem>>, vector<1x1x8x128xbf16>
    %64 = vector.shape_cast %63 : vector<1x1x8x128xbf16> to vector<8x128xbf16>
    %65 = vector.shape_cast %62 : vector<8x128xbf16> to vector<1x1x8x128xbf16>
    tpu.vector_store %arg12[%c0_31, %c3, %c0_32, %c0_33], %65 {strides = array<i32>} : memref<1x4x8x128xbf16, #tpu.memory_space<vmem>>, vector<1x1x8x128xbf16>,
    %c0_34 = arith.constant 0 : index
    %c0_35 = arith.constant 0 : index
    %66 = vector.load %arg8[%c0_34, %c0_35] : memref<32x512xbf16, #tpu.memory_space<vmem>>, vector<32x512xbf16>
    %cst_36 = arith.constant dense<0.000000e+00> : vector<8x512xf32>
    %67 = tpu.matmul %40, %66, %cst_36 {dimension_numbers = #tpu.dot_dimension_numbers<[1], [0], [0], [1], [0, 0, 1, 1], [], []>} : vector<8x32xbf16>, vector<32x512xbf16>, vector<8x512xf32> -> vector<8x512xf32>
    %c0_37 = arith.constant 0 : index
    %c0_38 = arith.constant 0 : index
    %68 = vector.load %arg9[%c0_37, %c0_38] : memref<1x512xf32, #tpu.memory_space<vmem>>, vector<1x512xf32>
    %69 = vector.broadcast %68 : vector<1x512xf32> to vector<8x512xf32>
    %70 = arith.addf %67, %69 : vector<8x512xf32>
    %71 = vector.extract_strided_slice %70 {offsets = [0, 0], sizes = [8, 128], strides = [1, 1]} : vector<8x512xf32> to vector<8x128xf32>
    %72 = arith.truncf %71 : vector<8x128xf32> to vector<8x128xbf16>
    %c0_39 = arith.constant 0 : index
    %c0_40 = arith.constant 0 : index
    %c0_41 = arith.constant 0 : index
    %c0_42 = arith.constant 0 : index
    %73 = vector.load %arg13[%c0_39, %c0_40, %c0_41, %c0_42] : memref<1x4x8x128xbf16, #tpu.memory_space<vmem>>, vector<1x1x8x128xbf16>
    %74 = vector.shape_cast %73 : vector<1x1x8x128xbf16> to vector<8x128xbf16>
    %75 = vector.shape_cast %72 : vector<8x128xbf16> to vector<1x1x8x128xbf16>
    tpu.vector_store %arg13[%c0_39, %c0_40, %c0_41, %c0_42], %75 {strides = array<i32>} : memref<1x4x8x128xbf16, #tpu.memory_space<vmem>>, vector<1x1x8x128xbf16>,
    %76 = vector.extract_strided_slice %70 {offsets = [0, 128], sizes = [8, 128], strides = [1, 1]} : vector<8x512xf32> to vector<8x128xf32>
    %77 = arith.truncf %76 : vector<8x128xf32> to vector<8x128xbf16>
    %c0_43 = arith.constant 0 : index
    %c1_44 = arith.constant 1 : index
    %c0_45 = arith.constant 0 : index
    %c0_46 = arith.constant 0 : index
    %78 = vector.load %arg13[%c0_43, %c1_44, %c0_45, %c0_46] : memref<1x4x8x128xbf16, #tpu.memory_space<vmem>>, vector<1x1x8x128xbf16>
    %79 = vector.shape_cast %78 : vector<1x1x8x128xbf16> to vector<8x128xbf16>
    %80 = vector.shape_cast %77 : vector<8x128xbf16> to vector<1x1x8x128xbf16>
    tpu.vector_store %arg13[%c0_43, %c1_44, %c0_45, %c0_46], %80 {strides = array<i32>} : memref<1x4x8x128xbf16, #tpu.memory_space<vmem>>, vector<1x1x8x128xbf16>,
    %81 = vector.extract_strided_slice %70 {offsets = [0, 256], sizes = [8, 128], strides = [1, 1]} : vector<8x512xf32> to vector<8x128xf32>
    %82 = arith.truncf %81 : vector<8x128xf32> to vector<8x128xbf16>
    %c0_47 = arith.constant 0 : index
    %c2_48 = arith.constant 2 : index
    %c0_49 = arith.constant 0 : index
    %c0_50 = arith.constant 0 : index
    %83 = vector.load %arg13[%c0_47, %c2_48, %c0_49, %c0_50] : memref<1x4x8x128xbf16, #tpu.memory_space<vmem>>, vector<1x1x8x128xbf16>
    %84 = vector.shape_cast %83 : vector<1x1x8x128xbf16> to vector<8x128xbf16>
    %85 = vector.shape_cast %82 : vector<8x128xbf16> to vector<1x1x8x128xbf16>
    tpu.vector_store %arg13[%c0_47, %c2_48, %c0_49, %c0_50], %85 {strides = array<i32>} : memref<1x4x8x128xbf16, #tpu.memory_space<vmem>>, vector<1x1x8x128xbf16>,
    %86 = vector.extract_strided_slice %70 {offsets = [0, 384], sizes = [8, 128], strides = [1, 1]} : vector<8x512xf32> to vector<8x128xf32>
    %87 = arith.truncf %86 : vector<8x128xf32> to vector<8x128xbf16>
    %c0_51 = arith.constant 0 : index
    %c3_52 = arith.constant 3 : index
    %c0_53 = arith.constant 0 : index
    %c0_54 = arith.constant 0 : index
    %88 = vector.load %arg13[%c0_51, %c3_52, %c0_53, %c0_54] : memref<1x4x8x128xbf16, #tpu.memory_space<vmem>>, vector<1x1x8x128xbf16>
    %89 = vector.shape_cast %88 : vector<1x1x8x128xbf16> to vector<8x128xbf16>
    %90 = vector.shape_cast %87 : vector<8x128xbf16> to vector<1x1x8x128xbf16>
    tpu.vector_store %arg13[%c0_51, %c3_52, %c0_53, %c0_54], %90 {strides = array<i32>} : memref<1x4x8x128xbf16, #tpu.memory_space<vmem>>, vector<1x1x8x128xbf16>,
    %c0_55 = arith.constant 0 : index
    %c0_56 = arith.constant 0 : index
    %91 = vector.load %arg10[%c0_55, %c0_56] : memref<32x512xbf16, #tpu.memory_space<vmem>>, vector<32x512xbf16>
    %cst_57 = arith.constant dense<0.000000e+00> : vector<8x512xf32>
    %92 = tpu.matmul %40, %91, %cst_57 {dimension_numbers = #tpu.dot_dimension_numbers<[1], [0], [0], [1], [0, 0, 1, 1], [], []>} : vector<8x32xbf16>, vector<32x512xbf16>, vector<8x512xf32> -> vector<8x512xf32>
    %c0_58 = arith.constant 0 : index
    %c0_59 = arith.constant 0 : index
    %93 = vector.load %arg11[%c0_58, %c0_59] : memref<1x512xf32, #tpu.memory_space<vmem>>, vector<1x512xf32>
    %94 = vector.broadcast %93 : vector<1x512xf32> to vector<8x512xf32>
    %95 = arith.addf %92, %94 : vector<8x512xf32>
    %96 = vector.extract_strided_slice %95 {offsets = [0, 0], sizes = [8, 128], strides = [1, 1]} : vector<8x512xf32> to vector<8x128xf32>
    %97 = arith.truncf %96 : vector<8x128xf32> to vector<8x128xbf16>
    %c0_60 = arith.constant 0 : index
    %c0_61 = arith.constant 0 : index
    %c0_62 = arith.constant 0 : index
    %c0_63 = arith.constant 0 : index
    %98 = vector.load %arg14[%c0_60, %c0_61, %c0_62, %c0_63] : memref<1x4x8x128xbf16, #tpu.memory_space<vmem>>, vector<1x1x8x128xbf16>
    %99 = vector.shape_cast %98 : vector<1x1x8x128xbf16> to vector<8x128xbf16>
    %100 = vector.shape_cast %97 : vector<8x128xbf16> to vector<1x1x8x128xbf16>
    tpu.vector_store %arg14[%c0_60, %c0_61, %c0_62, %c0_63], %100 {strides = array<i32>} : memref<1x4x8x128xbf16, #tpu.memory_space<vmem>>, vector<1x1x8x128xbf16>,
    %101 = vector.extract_strided_slice %95 {offsets = [0, 128], sizes = [8, 128], strides = [1, 1]} : vector<8x512xf32> to vector<8x128xf32>
    %102 = arith.truncf %101 : vector<8x128xf32> to vector<8x128xbf16>
    %c0_64 = arith.constant 0 : index
    %c1_65 = arith.constant 1 : index
    %c0_66 = arith.constant 0 : index
    %c0_67 = arith.constant 0 : index
    %103 = vector.load %arg14[%c0_64, %c1_65, %c0_66, %c0_67] : memref<1x4x8x128xbf16, #tpu.memory_space<vmem>>, vector<1x1x8x128xbf16>
    %104 = vector.shape_cast %103 : vector<1x1x8x128xbf16> to vector<8x128xbf16>
    %105 = vector.shape_cast %102 : vector<8x128xbf16> to vector<1x1x8x128xbf16>
    tpu.vector_store %arg14[%c0_64, %c1_65, %c0_66, %c0_67], %105 {strides = array<i32>} : memref<1x4x8x128xbf16, #tpu.memory_space<vmem>>, vector<1x1x8x128xbf16>,
    %106 = vector.extract_strided_slice %95 {offsets = [0, 256], sizes = [8, 128], strides = [1, 1]} : vector<8x512xf32> to vector<8x128xf32>
    %107 = arith.truncf %106 : vector<8x128xf32> to vector<8x128xbf16>
    %c0_68 = arith.constant 0 : index
    %c2_69 = arith.constant 2 : index
    %c0_70 = arith.constant 0 : index
    %c0_71 = arith.constant 0 : index
    %108 = vector.load %arg14[%c0_68, %c2_69, %c0_70, %c0_71] : memref<1x4x8x128xbf16, #tpu.memory_space<vmem>>, vector<1x1x8x128xbf16>
    %109 = vector.shape_cast %108 : vector<1x1x8x128xbf16> to vector<8x128xbf16>
    %110 = vector.shape_cast %107 : vector<8x128xbf16> to vector<1x1x8x128xbf16>
    tpu.vector_store %arg14[%c0_68, %c2_69, %c0_70, %c0_71], %110 {strides = array<i32>} : memref<1x4x8x128xbf16, #tpu.memory_space<vmem>>, vector<1x1x8x128xbf16>,
    %111 = vector.extract_strided_slice %95 {offsets = [0, 384], sizes = [8, 128], strides = [1, 1]} : vector<8x512xf32> to vector<8x128xf32>
    %112 = arith.truncf %111 : vector<8x128xf32> to vector<8x128xbf16>
    %c0_72 = arith.constant 0 : index
    %c3_73 = arith.constant 3 : index
    %c0_74 = arith.constant 0 : index
    %c0_75 = arith.constant 0 : index
    %113 = vector.load %arg14[%c0_72, %c3_73, %c0_74, %c0_75] : memref<1x4x8x128xbf16, #tpu.memory_space<vmem>>, vector<1x1x8x128xbf16>
    %114 = vector.shape_cast %113 : vector<1x1x8x128xbf16> to vector<8x128xbf16>
    %115 = vector.shape_cast %112 : vector<8x128xbf16> to vector<1x1x8x128xbf16>
    tpu.vector_store %arg14[%c0_72, %c3_73, %c0_74, %c0_75], %115 {strides = array<i32>} : memref<1x4x8x128xbf16, #tpu.memory_space<vmem>>, vector<1x1x8x128xbf16>,
    return
  }
  func.func @transform_0(%arg0: i32, %arg1: i32) -> (i32, i32, i32) {
    %c0_i32 = arith.constant 0 : i32
    %c0_i32_0 = arith.constant 0 : i32
    return %arg0, %arg1, %c0_i32 : i32, i32, i32
  }
  func.func @transform_1(%arg0: i32, %arg1: i32) -> (i32, i32, i32) {
    %c0_i32 = arith.constant 0 : i32
    %c0_i32_0 = arith.constant 0 : i32
    return %arg0, %arg1, %c0_i32 : i32, i32, i32
  }
  func.func @transform_2(%arg0: i32, %arg1: i32) -> (i32, i32) {
    %c0_i32 = arith.constant 0 : i32
    %c0_i32_0 = arith.constant 0 : i32
    %c0_i32_1 = arith.constant 0 : i32
    return %c0_i32, %c0_i32_0 : i32, i32
  }
  func.func @transform_3(%arg0: i32, %arg1: i32) -> (i32, i32) {
    %c0_i32 = arith.constant 0 : i32
    %c0_i32_0 = arith.constant 0 : i32
    %c0_i32_1 = arith.constant 0 : i32
    return %c0_i32, %c0_i32_0 : i32, i32
  }
  func.func @transform_4(%arg0: i32, %arg1: i32) -> (i32, i32) {
    %c0_i32 = arith.constant 0 : i32
    %c0_i32_0 = arith.constant 0 : i32
    %c0_i32_1 = arith.constant 0 : i32
    return %c0_i32, %c0_i32_0 : i32, i32
  }
  func.func @transform_5(%arg0: i32, %arg1: i32) -> (i32, i32) {
    %c0_i32 = arith.constant 0 : i32
    %c0_i32_0 = arith.constant 0 : i32
    %c0_i32_1 = arith.constant 0 : i32
    return %c0_i32, %c0_i32_0 : i32, i32
  }
  func.func @transform_6(%arg0: i32, %arg1: i32) -> (i32, i32) {
    %c0_i32 = arith.constant 0 : i32
    %c0_i32_0 = arith.constant 0 : i32
    %c0_i32_1 = arith.constant 0 : i32
    return %c0_i32, %c0_i32_0 : i32, i32
  }
  func.func @transform_7(%arg0: i32, %arg1: i32) -> (i32, i32) {
    %c0_i32 = arith.constant 0 : i32
    %c0_i32_0 = arith.constant 0 : i32
    %c0_i32_1 = arith.constant 0 : i32
    return %c0_i32, %c0_i32_0 : i32, i32
  }
  func.func @transform_8(%arg0: i32, %arg1: i32) -> (i32, i32) {
    %c0_i32 = arith.constant 0 : i32
    %c0_i32_0 = arith.constant 0 : i32
    %c0_i32_1 = arith.constant 0 : i32
    return %c0_i32, %c0_i32_0 : i32, i32
  }
  func.func @transform_9(%arg0: i32, %arg1: i32) -> (i32, i32) {
    %c0_i32 = arith.constant 0 : i32
    %c0_i32_0 = arith.constant 0 : i32
    %c0_i32_1 = arith.constant 0 : i32
    return %c0_i32, %c0_i32_0 : i32, i32
  }
  func.func @transform_10(%arg0: i32, %arg1: i32) -> (i32, i32, i32, i32) {
    %c0_i32 = arith.constant 0 : i32
    %c0_i32_0 = arith.constant 0 : i32
    %c0_i32_1 = arith.constant 0 : i32
    return %arg0, %c0_i32, %arg1, %c0_i32_0 : i32, i32, i32, i32
  }
  func.func @transform_11(%arg0: i32, %arg1: i32) -> (i32, i32, i32, i32) {
    %c0_i32 = arith.constant 0 : i32
    %c0_i32_0 = arith.constant 0 : i32
    %c0_i32_1 = arith.constant 0 : i32
    return %arg0, %c0_i32, %arg1, %c0_i32_0 : i32, i32, i32, i32
  }
  func.func @transform_12(%arg0: i32, %arg1: i32) -> (i32, i32, i32, i32) {
    %c0_i32 = arith.constant 0 : i32
    %c0_i32_0 = arith.constant 0 : i32
    %c0_i32_1 = arith.constant 0 : i32
    return %arg0, %c0_i32, %arg1, %c0_i32_0 : i32, i32, i32, i32
  }
}

</mosaic_0001>

<bundles_post_ra>
// kernel: tpu_custom_call.1
= control target key start
LH: loop header
LB: loop body
LE: loop exit
PB: predicated region body
PF: predicated region fallthrough
CT: control target
= control target key end

     0   :  { %s2543_s0 = inlined_call_operand.hbm [shape: f32[2,8,32], index: 0, kind: input, shape index: {}]   ;;  %s2544_s1 = inlined_call_operand.hbm [shape: f32[2,8,32], index: 1, kind: input, shape index: {}]   ;;  %s2545_s2 = inlined_call_operand.hbm [shape: bf16[32,64], index: 2, kind: input, shape index: {}]   ;;  %s2546_s3 = inlined_call_operand.hbm [shape: f32[1,64], index: 3, kind: input, shape index: {}]   ;;  %s2547_s4 = inlined_call_operand.hbm [shape: bf16[32,512], index: 4, kind: input, shape index: {}]   ;;  %s2548_s5 = inlined_call_operand.vmem [shape: f32[1,512], index: 5, kind: input, shape index: {}]   ;;  %s2549_s6 = inlined_call_operand.hbm [shape: bf16[32,512], index: 6, kind: input, shape index: {}]   ;;  %s2550_s7 = inlined_call_operand.vmem [shape: f32[1,512], index: 7, kind: input, shape index: {}]   ;;  %s2551_s8 = inlined_call_operand.hbm [shape: bf16[32,512], index: 8, kind: input, shape index: {}]   ;;  %s2552_s9 = inlined_call_operand.vmem [shape: f32[1,512], index: 9, kind: input, shape index: {}]   ;;  %s2553_s10 = inlined_call_operand.hbm [shape: bf16[2,4,8,128], index: 10, kind: output, shape index: {0}]   ;;  %s2554_s11 = inlined_call_operand.hbm [shape: bf16[2,4,8,128], index: 11, kind: output, shape index: {1}]   ;;  %s2555_s12 = inlined_call_operand.hbm [shape: bf16[2,4,8,128], index: 12, kind: output, shape index: {2}]  }
   0x1   :  { %2562 = sst [smem:[#allocation28_spill]] %s2545_s2 }
   0x2   :  { %2563 = sst [smem:[#allocation29_spill]] %s2546_s3 }
   0x3   :  { %2564 = sst [smem:[#allocation30_spill]] %s2547_s4 }
   0x4   :  { %2565 = sst [smem:[#allocation31_spill]] %s2549_s6 }
   0x5   :  { %2566 = sst [smem:[#allocation32_spill]] %s2551_s8 }
   0x6   :  { %2567 = sst [smem:[#allocation33_spill]] %s2554_s11 }
   0x7   :  { %2568 = sst [smem:[#allocation34_spill]] %s2555_s12 }
   0x8   :  { %18 = vsyncpa [#allocation3], 0 }
   0x9   :  { %20 = vsyncpa [#allocation3 + $0x1], 0 }
   0xa   :  { %21 = vsyncpa [#allocation6], 0 }
   0xb   :  { %23 = vsyncpa [#allocation6 + $0x1], 0 }
   0xc   :  { %24 = vsyncpa [#allocation9], 0 }
   0xd   :  { %25 = vsyncpa [#allocation12], 0 }
   0xe   :  { %26 = vsyncpa [#allocation4], 0 }
   0xf   :  { %28 = vsyncpa [#allocation4 + $0x1], 0 }
  0x10   :  { %29 = vsyncpa [#allocation16], 0 }
  0x11   :  { %31 = vsyncpa [#allocation16 + $0x1], 0  ;;  %s2182_s21 = smov 0   ;;  %s2184_s22 = smov 0  }
  0x12   :  { %s2186_s23 = smov 0   ;;  %s2188_s24 = smov 0  }
  0x13   :  { %s2190_s25 = smov 0   ;;  %s2192_s26 = smov 0  }
  0x14 LB: > { %2569 = sst [smem:[#allocation25_spill]] %s2091_s25  ;;  %s2213_s27 = sadd.s32 4294967295, %s2095_s26   ;;  %s2095_s26 = sphi %s2192_s26, %s37_s26   ;;  %s2091_s25 = sphi %s2190_s25, %s2598_s25   ;;  %s2087_s24 = sphi %s2188_s24, %s2597_s24   ;;  %s2083_s23 = sphi %s2186_s23, %s2601_s23   ;;  %s2079_s22 = sphi %s2184_s22, %s2600_s22   ;;  %s2075_s21 = sphi %s2182_s21, %s2599_s21  }
  0x15   : > { %p1451_p0 = scmp.ge.s32.totalorder %s2095_s26, 1  ;;  %p2558_p1 = scmp.eq.s32.totalorder %s2213_s27, 0 }
  0x16   : > { %p362_p2 = scmp.lt.s32.totalorder %s2095_s26, 3  ;;  %s2097_s29 = smov [#allocation7]  }
  0x17   : > { %s374_s30 = sshll.u32 %s2097_s29, 4  ;;  %s2098_s14 = smov [#allocation8]   ;;  %s375_s30 = int_to_ptr.vmem [resolvable:$true] %s374_s30 }
  0x18   : > { %p2218_p3 = pnand %p1451_p0, %p362_p2  ;;  %s388_s15 = sshll.u32 %s2098_s14, 4  ;;  %s389_s15 = int_to_ptr.vmem [resolvable:$true] %s388_s15 }
  0x19   : > { %s1768_s17 = scalar_lea.vmem %s375_s30, 256  ;;  %p1776_p11 = scmp.lt.s32.totalorder %s375_s30, %s375_s30 }
  0x1a   : > { %p1605_p4 = pneg %p2218_p3  ;;  %p1769_p8 = scmp.ne.s32.totalorder %s375_s30, %s1768_s17 }
  0x1b   : > { %p1777_p12 = scmp.lt.s32.totalorder %s1768_s17, %s1768_s17 }
  0x1c   : > { %p2227_p6 = pnand %p1605_p4, %p2558_p1 }
  0x1d   : > { %p1778_p13 = por %p1777_p12, %p1776_p11 }
  0x1e   : > { %p2233_p7 = pneg %p2227_p6 }
  0x20   : > { %p1771_p9 = pnand %p1769_p8, %p2233_p7 }
  0x22   : > { %p1772_p10 = pneg %p1771_p9 }
  0x24   : > { %p1779_p0 = pnand %p1778_p13, %p1772_p10 }
  0x26   : > { %1782 = shalt.err (!%p1779_p0)
}
  0x27   : > { %s2099_s18 = smov 64   ;;  %s2100_s19 = smov 4  }
  0x28   : > { %s2573_s2 = sld [smem:[#allocation28_spill]]  ;;  %s1794_s14 = scalar_lea.vmem %s389_s15, 16 }
  0x29   : > { %p1795_p2 = scmp.ne.s32.totalorder %s389_s15, %s1794_s14  ;;  %s1801_s12 = scalar_lea.vmem %s389_s15, 32 }
  0x2a   : > { %p1802_p9 = scmp.lt.s32.totalorder %s389_s15, %s389_s15  ;;  %p1803_p5 = scmp.lt.s32.totalorder %s1801_s12, %s1794_s14 }
  0x2b   : > { %p1797_p4 = pnand %p1795_p2, %p2233_p7 }
  0x2c   : > { %p1804_p11 = por %p1803_p5, %p1802_p9 }
  0x2d   : > { %p1798_p8 = pneg %p1797_p4 }
  0x2e   : > { %1608 = dma.hbm_to_vmem [thread:$0]  (!%p2227_p6), %s2573_s2, 256, %s375_s30, [#allocation6], %s2099_s18, %s2099_s18, %s2100_s19  }
  0x2f   : > { %p1805_p10 = pnand %p1804_p11, %p1798_p8 }
  0x31   : > { %1808 = shalt.err (!%p1805_p10)
}
  0x32   : > { %s2574_s3 = sld [smem:[#allocation29_spill]]  ;;  %s2101_s20 = smov [#allocation11]  }
  0x33   : > { %s414_s30 = sshll.u32 %s2101_s20, 4  ;;  %s2102_s18 = smov [#allocation10]   ;;  %s415_s30 = int_to_ptr.vmem [resolvable:$true] %s414_s30 }
  0x34   : > { %s398_s19 = sshll.u32 %s2102_s18, 4  ;;  %s1820_s29 = scalar_lea.vmem %s415_s30, 1024  ;;  %s399_s19 = int_to_ptr.vmem [resolvable:$true] %s398_s19 }
  0x35   : > { %p1821_p12 = scmp.ne.s32.totalorder %s415_s30, %s1820_s29  ;;  %p1828_p0 = scmp.lt.s32.totalorder %s415_s30, %s415_s30 }
  0x36   : > { %p1829_p2 = scmp.lt.s32.totalorder %s1820_s29, %s1820_s29 }
  0x37   : > { %p1823_p13 = pnand %p1821_p12, %p2233_p7 }
  0x38   : > { %1611 = dma.hbm_to_vmem [thread:$0]  (!%p2227_p6), %s2574_s3, 16, %s389_s15, [#allocation9]  }
  0x39   : > { %p1824_p5 = pneg %p1823_p13  ;;  %p1830_p4 = por %p1829_p2, %p1828_p0 }
  0x3b   : > { %p1831_p8 = pnand %p1830_p4, %p1824_p5 }
  0x3d   : > { %1834 = shalt.err (!%p1831_p8)
}
  0x3e   : > { %s2103_s12 = smov 256   ;;  %s2104_s11 = smov 16  }
  0x3f   : > { %s2575_s6 = sld [smem:[#allocation31_spill]]  ;;  %s1846_s17 = scalar_lea.vmem %s399_s19, 1024 }
  0x40   : > { %p1847_p9 = scmp.ne.s32.totalorder %s399_s19, %s1846_s17  ;;  %p1854_p12 = scmp.lt.s32.totalorder %s399_s19, %s399_s19 }
  0x41   : > { %p1855_p13 = scmp.lt.s32.totalorder %s1846_s17, %s1846_s17 }
  0x42   : > { %p1849_p11 = pnand %p1847_p9, %p2233_p7 }
  0x43   : > { %p1856_p1 = por %p1855_p13, %p1854_p12 }
  0x44   : > { %p1850_p10 = pneg %p1849_p11 }
  0x45   : > { %1617 = dma.hbm_to_vmem [thread:$0]  (!%p2227_p6), %s2575_s6, 1024, %s415_s30, [#allocation12], %s2103_s12, %s2103_s12, %s2104_s11  }
  0x46   : > { %p1857_p0 = pnand %p1856_p1, %p1850_p10 }
  0x48   : > { %1860 = shalt.err (!%p1857_p0)
}
  0x49   : > { %s2576_s4 = sld [smem:[#allocation30_spill]]  ;;  %s2105_s29 = smov [#allocation13]  }
  0x4a   : > { %s430_s15 = sshll.u32 %s2105_s29, 4  ;;  %s431_s15 = int_to_ptr.vmem [resolvable:$true] %s430_s15 }
  0x4b   : > { %s1872_s30 = scalar_lea.vmem %s431_s15, 1024  ;;  %p1880_p8 = scmp.lt.s32.totalorder %s431_s15, %s431_s15 }
  0x4c   : > { %p1873_p5 = scmp.ne.s32.totalorder %s431_s15, %s1872_s30  ;;  %p1881_p9 = scmp.lt.s32.totalorder %s1872_s30, %s1872_s30 }
  0x4e   : > { %p1875_p2 = pnand %p1873_p5, %p2233_p7  ;;  %p1882_p11 = por %p1881_p9, %p1880_p8 }
  0x4f   : > { %1614 = dma.hbm_to_vmem [thread:$0]  (!%p2227_p6), %s2576_s4, 1024, %s399_s19, [#allocation9], %s2103_s12, %s2103_s12, %s2104_s11  }
  0x50   : > { %p1876_p4 = pneg %p1875_p2 }
  0x52   : > { %p1883_p1 = pnand %p1882_p11, %p1876_p4 }
  0x54   : > { %1886 = shalt.err (!%p1883_p1)
}
  0x55   : > { %s2577_s8 = sld [smem:[#allocation32_spill]]  ;;  %s2559_s16 = sadd.s32 4294967294, %s2095_s26  }
  0x56   : > { %s49_s13 = sadd.s32 1, %s2091_s25  ;;  %s58_s19 = sadd.s32 1, %s2083_s23 }
  0x57   : > { %p51_p7 = scmp.ge.s32.totalorder %s49_s13, 2  ;;  %p65_p10 = scmp.ne.s32.totalorder %s2083_s23, %s2079_s22 }
  0x58   : > { %p66_p12 = scmp.eq.s32.totalorder %s2095_s26, 0  ;;  %p71_p13 = scmp.ne.s32.totalorder %s2079_s22, %s2075_s21 }
  0x59   : > { %s2603_s13 = smov (%p51_p7, %s49_s13), 0  ;;  %p2580_p5 = scmp.eq.s32.totalorder %s2213_s27, 0 }
  0x5a   : > { %2578 = sst [smem:[#allocation26_spill]] %s2603_s13  ;;  %p2282_p0 = por %p66_p12, %p65_p10 }
  0x5b   : > { %1620 = dma.hbm_to_vmem [thread:$0]  (!%p2227_p6), %s2577_s8, 1024, %s431_s15, [#allocation12], %s2103_s12, %s2103_s12, %s2104_s11  }
  0x5c   : > { %p2288_p6 = por %p2580_p5, %p71_p13  ;;  %s53_s11 = ssub.s32 %s2091_s25, %s2603_s13 }
  0x5d   : > { %p293_p2 = scmp.eq.s32.totalorder %s2213_s27, 1  ;;  %p56_p4 = scmp.eq.s32.totalorder %s53_s11, 0 }
  0x5e   : > { %p299_p8 = scmp.eq.s32.totalorder %s2559_s16, 1  ;;  %p1643_p11 = scmp.lt.s32.totalorder %s2095_s26, 2 }
  0x5f   : > { %p2297_p9 = por %p293_p2, %p65_p10  ;;  %s447_s30 = sand.u32 1, %s2083_s23  }
  0x60   : > { %s2303_s29 = scalar_select %p56_p4, %s2083_s23, %s58_s19  }
  0x61   : > { %p2305_p1 = por %p299_p8, %p71_p13  ;;  %s1458_s14 = sshll.u32 %s447_s30, 3 }
  0x62   : > { %2583 = sst [smem:[#allocation27_spill]] %s2303_s29  ;;  %s1459_s17 = sshll.u32 %s2091_s25, 7 }
  0x63   : > { %s457_s11 = scalar_lea.hbm %s2543_s0, %s1459_s17  ;;  %s451_s4 = scalar_lea.vmem [#allocation2], %s1458_s14 }
  0x64   : > { %s459_s16 = sshll.u32 %s451_s4, 4  ;;  %p2316_p7 = pnand %p1643_p11, %p2282_p0  ;;  %s460_s16 = int_to_ptr.vmem [resolvable:$true] %s459_s16 }
  0x65   : > { %s2323_s13 = scalar_lea.hbm %s2544_s1, %s1459_s17  ;;  %s466_s25 = sand.u32 1, %s2095_s26  }
  0x66   : > { %s448_s29 = scalar_lea.sflag [#allocation3], %s447_s30  ;;  %p1889_p10 = pneg %p2316_p7 }
  0x67   : > { %s1900_s2 = scalar_lea.vmem %s460_s16, 128  ;;  %s2106_s3 = smov [#allocation2]  }
  0x68   : > { %p1901_p12 = scmp.ne.s32.totalorder %s460_s16, %s1900_s2  ;;  %s1905_s4 = sshll.u32 %s2106_s3, 4  ;;  %s1906_s4 = int_to_ptr.vmem [resolvable:$false] %s1905_s4 }
  0x69   : > { %s1907_s20 = scalar_lea.vmem %s1906_s4, 256  ;;  %p1908_p5 = scmp.lt.s32.totalorder %s460_s16, %s1906_s4 }
  0x6a   : > { %p1903_p13 = pnand %p1901_p12, %p1889_p10  ;;  %p1909_p2 = scmp.lt.s32.totalorder %s1907_s20, %s1900_s2 }
  0x6c   : > { %p1904_p0 = pneg %p1903_p13  ;;  %p1910_p4 = por %p1909_p2, %p1908_p5 }
  0x6e   : > { %p1911_p8 = pnand %p1910_p4, %p1904_p0 }
  0x70   : > { %1914 = shalt.err (!%p1911_p8)
}
  0x71   : > { %1624 = dma.hbm_to_vmem [thread:$0]  (!%p2316_p7), %s457_s11, 128, %s460_s16, %s448_s29  }
  0x72   : > { %s470_s8 = scalar_lea.vmem [#allocation5], %s1458_s14  ;;  %s467_s17 = scalar_lea.sflag [#allocation6], %s466_s25 }
  0x73   : > { %s478_s30 = sshll.u32 %s470_s8, 4  ;;  %s2107_s3 = smov [#allocation5]   ;;  %s479_s30 = int_to_ptr.vmem [resolvable:$true] %s478_s30 }
  0x74   : > { %s1928_s19 = scalar_lea.vmem %s479_s30, 128  ;;  %s1933_s4 = sshll.u32 %s2107_s3, 4  ;;  %s1934_s4 = int_to_ptr.vmem [resolvable:$false] %s1933_s4 }
  0x75   : > { %p1929_p11 = scmp.ne.s32.totalorder %s479_s30, %s1928_s19  ;;  %s1935_s2 = scalar_lea.vmem %s1934_s4, 256 }
  0x76   : > { %p1936_p0 = scmp.lt.s32.totalorder %s479_s30, %s1934_s4  ;;  %p1937_p5 = scmp.lt.s32.totalorder %s1935_s2, %s1928_s19 }
  0x77   : > { %p1931_p12 = pnand %p1929_p11, %p1889_p10 }
  0x78   : > { %p1938_p2 = por %p1937_p5, %p1936_p0 }
  0x79   : > { %p1932_p13 = pneg %p1931_p12 }
  0x7b   : > { %p1939_p4 = pnand %p1938_p2, %p1932_p13 }
  0x7d   : > { %1942 = shalt.err (!%p1939_p4)
}
  0x7e   : > { %1627 = dma.hbm_to_vmem [thread:$0]  (!%p2316_p7), %s2323_s13, 128, %s479_s30, %s467_s17  }
  0x7f   : > { %487 = sbr.rel (%p2218_p3) target bundleno = 761 (0x2f9), region = 60  ;;  %s2342_s25 = sand.u32 (!%p2218_p3), 1, %s2079_s22  }
  0x80   : > { %s1463_s16 = sshll.u32 (!%p2218_p3), %s2342_s25, 3  ;;  %s490_s29 = scalar_lea.sflag (!%p2218_p3), [#allocation3], %s2342_s25 }
  0x81   : > { %s493_s14 = scalar_lea.vmem (!%p2218_p3), [#allocation2], %s1463_s16 }
  0x84   : > { %2046 = dma.done.wait (%p2288_p6), %s490_s29, 128  }
  0x85   : > { %2048 = vsyncadd (%p2288_p6), %s490_s29, 4294967168  ;;  %s498_s6 = sand.u32 1, %s2213_s27   ;;  %s502_s13 = scalar_lea.vmem [#allocation5], %s1463_s16 }
  0x86   : > { %s499_s28 = scalar_lea.sflag [#allocation6], %s498_s6 }
  0x87   : > { %2050 = dma.done.wait (%p2288_p6), %s499_s28, 128  }
  0x88   : > { %2052 = vsyncadd (%p2288_p6), %s499_s28, 4294967168  ;;  %p2586_p3 = scmp.eq.s32.totalorder %s2213_s27, 0 }
  0x8a   : > { %2054 = dma.done.wait (%p2586_p3), [#allocation6], 256   ;;  %p2587_p7 = pmov %p2586_p3 }
  0x8b   : > { %p2588_p10 = pmov %p2586_p3 }
  0x8c   : > { %2056 = vsyncadd (%p2587_p7), [#allocation6], 4294967040 }
  0x8d   : > { %2058 = dma.done.wait (%p2588_p10), [#allocation9], 1040   ;;  %p2589_p8 = pmov %p2586_p3 }
  0x8e   : > { %p2590_p11 = pmov %p2586_p3 }
  0x8f   : > { %2060 = vsyncadd (%p2589_p8), [#allocation9], 4294966256 }
  0x90   : > { %2062 = dma.done.wait (%p2590_p11), [#allocation12], 2048   ;;  %p2591_p12 = pmov %p2586_p3 }
  0x91   : > { %v2108_v0 = vmov 0.0   ;;  %vm2109_vm0 = vmmov 0   ;;  %vm612_vm1 = vcmask 261120   ;;  %v579_v1 = vld [vmem:[%s493_s14] sm:$0xff]  ;;  %v580_v5 = vld [vmem:[%s502_s13] sm:$0xff]  ;;  %v2110_v26 = vmov 0  }
  0x92   : > { %2064 = vsyncadd (%p2591_p12), [#allocation12], 4294965248  ;;  %1567 = vmatprep.subr.bf16.mxu0 %v2108_v0  ;;  %1571 = vmatprep.mubr.msk.bf16.mxu0 %vm2109_vm0, %v2108_v0  ;;  %v656_v2 = vsel %vm612_vm1, %v579_v1, 0.0  ;;  %v1713_v3 = vld [vmem:[#allocation7 + $0x8] sm:$0xff]   ;;  %v1714_v4 = vld [vmem:[#allocation7] sm:$0xff]   ;;  %s2111_s12 = smov 96   ;;  %v688_v58 = vlaneseq }
  0x93   : > { %657 = vadd.xlane.f32.xlu0 %v656_v2  ;;  %1568 = vmatpush3.bf16.msra.mxu0 %v1713_v3  ;;  %v1473_v6 = vmul.f32 -1.442695, %v580_v5  ;;  %v1715_v17 = vld [vmem:[#allocation10 + $0x24] ss:$16 sps:$4 sm:$0xff]   ;;  %v1717_v18 = vld [vmem:[#allocation10 + $0x28] ss:$16 sps:$4 sm:$0xff]  }
  0x94   : > { %1569 = vmatprep.subr.bf16.mxu0 %v2108_v0  ;;  %v1719_v19 = vld [vmem:[#allocation10 + $0x2c] ss:$16 sps:$4 sm:$0xff]   ;;  %v1720_v20 = vld [vmem:[#allocation10 + $0x20] ss:$16 sps:$4 sm:$0xff]   ;;  %763 = vmatprep.subr.bf16.mxu1 %v1715_v17  ;;  %v1721_v21 = vld [vmem:[#allocation10 + $0x4] ss:$16 sps:$4 sm:$0xff]  }
  0x95   : > { %1751 = vpow2.f32 %v1473_v6  ;;  %764 = vmatpush1.bf16.msra.mxu1 %v1720_v20  ;;  %v1725_v22 = vld [vmem:[#allocation10 + $0xc] ss:$16 sps:$4 sm:$0xff]   ;;  %v1723_v23 = vld [vmem:[#allocation10 + $0x8] ss:$16 sps:$4 sm:$0xff]   ;;  %v1726_v24 = vld [vmem:[#allocation10] ss:$16 sps:$4 sm:$0xff]   ;;  %783 = vmatprep.mubr.bf16.mxu1 %v2110_v26 }
  0x96   : > { %765 = vmatprep.subr.bf16.mxu1 %v1721_v21  ;;  %v1729_v25 = vld [vmem:[#allocation11 + $0x24] ss:$16 sps:$4 sm:$0xff]   ;;  %v1732_v27 = vld [vmem:[#allocation11 + $0x2c] ss:$16 sps:$4 sm:$0xff]   ;;  %v1727_v43 = vld [vmem:[#allocation11 + $0x20] ss:$16 sps:$4 sm:$0xff]  }
  0x97   : > { %1570 = vmatpush3.bf16.msra.mxu0 %v1714_v4  ;;  %v1474_v28 = vld [vmem:[#allocation8] ss:$0 sm:$0xff]  ;;  %v1730_v44 = vld [vmem:[#allocation11 + $0x28] ss:$16 sps:$4 sm:$0xff]   ;;  %v1735_v46 = vld [vmem:[#allocation11 + $0x4] ss:$16 sps:$4 sm:$0xff]  }
  0x98   : > { %804 = vmatprep.subr.bf16.mxu0 %v1719_v19  ;;  %v1738_v47 = vld [vmem:[#allocation11 + $0xc] ss:$16 sps:$4 sm:$0xff]   ;;  %v1733_v48 = vld [vmem:[#allocation11] ss:$16 sps:$4 sm:$0xff]   ;;  %v1736_v49 = vld [vmem:[#allocation11 + $0x8] ss:$16 sps:$4 sm:$0xff]  }
  0x99   : > { %766 = vmatpush1.bf16.msra.mxu1 %v1726_v24  ;;  %v1741_v50 = vld [vmem:[#allocation13 + $0x24] ss:$16 sps:$4 sm:$0xff]   ;;  %v1744_v51 = vld [vmem:[#allocation13 + $0x2c] ss:$16 sps:$4 sm:$0xff]   ;;  %v1739_v52 = vld [vmem:[#allocation13 + $0x20] ss:$16 sps:$4 sm:$0xff]  }
  0x9a   : > { %926 = vmatprep.subr.bf16.mxu1 %v1729_v25  ;;  %v1742_v53 = vld [vmem:[#allocation13 + $0x28] ss:$16 sps:$4 sm:$0xff]   ;;  %v1747_v54 = vld [vmem:[#allocation13 + $0x4] ss:$16 sps:$4 sm:$0xff]   ;;  %v1750_v55 = vld [vmem:[#allocation13 + $0xc] ss:$16 sps:$4 sm:$0xff]  }
  0x9b   : > { %v1745_v56 = vld [vmem:[#allocation13] ss:$16 sps:$4 sm:$0xff]   ;;  %v1748_v57 = vld [vmem:[#allocation13 + $0x8] ss:$16 sps:$4 sm:$0xff]   ;;  %v689_v59 = vshrl.u32 %v688_v58, 7  ;;  %s2390_s8 = sshll.u32 %s2342_s25, 4 }
  0x9c   : > { %v686_v0 = vld [vmem:[%s2548_s5] sm:$0xf]  ;;  %s563_s30 = scalar_lea.vmem [#allocation14], %s2390_s8  ;;  %s2398_s19 = sshll.u32 %s2087_s24, 8 }
  0x9d   : > { %v2378_v60 = vsub.s32 0, %v689_v59  ;;  %v2380_v61 = vsub.s32 2, %v689_v59  ;;  %v2382_v62 = vsub.s32 1, %v689_v59  ;;  %v2384_v63 = vsub.s32 3, %v689_v59  ;;  %s1195_s17 = sshll.u32 %s563_s30, 4  ;;  %s2409_s16 = scalar_lea.hbm %s2553_s10, %s2398_s19  ;;  %s2400_s17 = int_to_ptr.vmem [resolvable:$true] %s1195_s17 }
  0x9e   : > { %s1171_s29 = scalar_lea.sflag [#allocation4], %s2342_s25  ;;  %s1943_s14 = scalar_lea.vmem %s2400_s17, 256 }
  0x9f   : > { %v699_v2 = vrot.slane %v686_v0, %v2380_v61  ;;  %v695_v3 = vrot.slane %v686_v0, %v2382_v62  ;;  %v703_v4 = vrot.slane %v686_v0, %v2384_v63  ;;  %p1944_p6 = scmp.ne.s32.totalorder %s2400_s17, %s1943_s14  ;;  %s2112_s28 = smov [#allocation14]  }
  0xa0   : > { %s1947_s13 = sshll.u32 %s2112_s28, 4  ;;  %s1948_s13 = int_to_ptr.vmem [resolvable:$false] %s1947_s13 }
  0xa1   : > { %p1945_p13 = pnand %p1944_p6, %p2297_p9  ;;  %p1950_p5 = scmp.lt.s32.totalorder %s2400_s17, %s1948_s13 }
  0xa2   : > { %v1752_v7 = vpop.eup %1751 }
  0xa3   : > { %v584_v8 = vadd.f32 1.0, %v1752_v7  ;;  %p1946_p0 = pneg %p1945_p13 }
  0xa5   : > { %1753 = vrcp.f32 %v584_v8 }
  0xb2   : > { %v1754_v9 = vpop.eup %1753 }
  0xb3   : > { %v587_v10 = vmul.f32 %v1754_v9, %v580_v5 }
  0xb5   : > { %v588_v11 = vpack.c.bf16 %v587_v10, %v587_v10 }
  0xb7   : > { %1572 = vmatmul.mubr.msk.bf16.vlgmr.msra.gmra.mxu0 %vm612_vm1, %v588_v11 }
  0xb8   : > { %805 = vmatpush1.bf16.msra.mxu0 %v1717_v18  ;;  %824 = vmatprep.mubr.bf16.mxu0 %v2110_v26 }
  0xb9   : > { %806 = vmatprep.subr.bf16.mxu0 %v1725_v22 }
  0xbc   : > { %807 = vmatpush1.bf16.msra.mxu0 %v1723_v23 }
  0xbd   : > { %967 = vmatprep.subr.bf16.mxu0 %v1732_v27 }
 0x11c   : > { %v658_v12 = vpop.xlane.xlu0 %657 }
 0x11d   : > { %v660_v13 = vmul.f32 0.03125, %v658_v12 }
 0x11f   : > { %v661_v14 = vsub.f32 %v579_v1, %v660_v13  ;;  %v691_v1 = vrot.slane %v686_v0, %v2378_v60 }
 0x121   : > { %v662_v15 = vmul.f32 %v661_v14, %v661_v14 }
 0x123   : > { %v663_v16 = vsel %vm612_vm1, %v662_v15, 0.0  ;;  %v852_v15 = vld [vmem:[%s2550_s7] sm:$0xf] }
 0x124   : > { %664 = vadd.xlane.f32.xlu0 %v663_v16  ;;  %v857_v20 = vrot.slane %v852_v15, %v2378_v60  ;;  %v865_v21 = vrot.slane %v852_v15, %v2380_v61  ;;  %v861_v22 = vrot.slane %v852_v15, %v2382_v62  ;;  %v869_v23 = vrot.slane %v852_v15, %v2384_v63 }
 0x177   : > { %v650_v29 = vpop.f32.mrf.mxu0 }
 0x178   : > { %v651_v30 = vadd.f32 %v1474_v28, %v650_v29 }
 0x179   : > { %v1573_v31 = vpop.f32.mrf.mxu0 }
 0x17a   : > { %v670_v32 = vadd.f32 1.0, %v651_v30 }
 0x17b   : > { %v653_v33 = vpop.f32.mrf.mxu0 }
 0x17c   : > { %672 = vrot.lane.b32.xlu1 %v670_v32, %s2111_s12  ;;  %s1949_s12 = scalar_lea.vmem %s1948_s13, 512 }
 0x17d   : > { %v1574_v34 = vpop.f32.mrf.mxu0  ;;  %p1951_p2 = scmp.lt.s32.totalorder %s1949_s12, %s1943_s14 }
 0x17f   : > { %p1952_p4 = por %p1951_p2, %p1950_p5 }
 0x181   : > { %p1953_p3 = pnand %p1952_p4, %p1946_p0 }
 0x1ad   : > { %v665_v35 = vpop.xlane.xlu0 %664 }
 0x1ae   : > { %v666_v36 = vmul.f32 0.03125, %v665_v35 }
 0x1b0   : > { %v667_v37 = vadd.f32 1e-06, %v666_v36 }
 0x1b2   : > { %1755 = vrsqrt.f32 %v667_v37 }
 0x1bf   : > { %v1756_v38 = vpop.eup %1755 }
 0x1c0   : > { %v669_v39 = vmul.f32 %v1756_v38, %v661_v14 }
 0x1ee   : > { %v673_v40 = vpop.permute.xlu1 %672 }
 0x1ef   : > { %v675_v41 = vmul.f32 %v673_v40, %v669_v39 }
 0x1f1   : > { %v676_v42 = vadd.f32 %v675_v41, %v651_v30 }
 0x1f3   : > { %v677_v45 = vpack.c.bf16 %v676_v42, %v676_v42 }
 0x1f5   : > { %1486 = vmatmul.mubr.msk.bf16.vlgmr.msra.gmra.mxu1 %vm612_vm1, %v677_v45  ;;  %1487 = vmatmul.mubr.msk.bf16.vlgmr.msra.gmra.mxu0 %vm612_vm1, %v677_v45 }
 0x1f6   : > { %927 = vmatpush1.bf16.msra.mxu1 %v1727_v43  ;;  %968 = vmatpush1.bf16.msra.mxu0 %v1730_v44 }
 0x1f7   : > { %928 = vmatprep.subr.bf16.mxu1 %v1735_v46  ;;  %969 = vmatprep.subr.bf16.mxu0 %v1738_v47 }
 0x1f8   : > { %946 = vmatprep.mubr.bf16.mxu1 %v2110_v26  ;;  %987 = vmatprep.mubr.bf16.mxu0 %v2110_v26 }
 0x1fa   : > { %929 = vmatpush1.bf16.msra.mxu1 %v1733_v48  ;;  %970 = vmatpush1.bf16.msra.mxu0 %v1736_v49 }
 0x1fb   : > { %1089 = vmatprep.subr.bf16.mxu1 %v1741_v50  ;;  %1130 = vmatprep.subr.bf16.mxu0 %v1744_v51 }
 0x1fd   : > { %1499 = vmatmul.mubr.msk.bf16.vlgmr.msra.gmra.mxu1 %vm612_vm1, %v677_v45  ;;  %1500 = vmatmul.mubr.msk.bf16.vlgmr.msra.gmra.mxu0 %vm612_vm1, %v677_v45 }
 0x1fe   : > { %1090 = vmatpush1.bf16.msra.mxu1 %v1739_v52  ;;  %1131 = vmatpush1.bf16.msra.mxu0 %v1742_v53 }
 0x1ff   : > { %1091 = vmatprep.subr.bf16.mxu1 %v1747_v54  ;;  %1132 = vmatprep.subr.bf16.mxu0 %v1750_v55 }
 0x200   : > { %1109 = vmatprep.mubr.bf16.mxu1 %v2110_v26  ;;  %1150 = vmatprep.mubr.bf16.mxu0 %v2110_v26 }
 0x202   : > { %1092 = vmatpush1.bf16.msra.mxu1 %v1745_v56  ;;  %1133 = vmatpush1.bf16.msra.mxu0 %v1748_v57 }
 0x205   : > { %1512 = vmatmul.mubr.msk.bf16.vlgmr.msra.gmra.mxu1 %vm612_vm1, %v677_v45  ;;  %1513 = vmatmul.mubr.msk.bf16.vlgmr.msra.gmra.mxu0 %vm612_vm1, %v677_v45 }
 0x2b5   : > { %v785_v5 = vpop.f32.mrf.mxu1  ;;  %v826_v6 = vpop.f32.mrf.mxu0 }
 0x2b6   : > { %v786_v9 = vadd.f32 %v785_v5, %v691_v1  ;;  %v827_v10 = vadd.f32 %v826_v6, %v699_v2 }
 0x2b7   : > { %v787_v7 = vpop.f32.mrf.mxu1  ;;  %v828_v8 = vpop.f32.mrf.mxu0 }
 0x2b8   : > { %v788_v11 = vadd.f32 %v787_v7, %v695_v3  ;;  %v829_v12 = vadd.f32 %v828_v8, %v703_v4 }
 0x2b9   : > { %v789_v13 = vpop.f32.mrf.mxu1  ;;  %v830_v14 = vpop.f32.mrf.mxu0 }
 0x2ba   : > { %v1534_v16 = vpack.c.bf16 %v788_v11, %v786_v9  ;;  %v1539_v17 = vpack.c.bf16 %v829_v12, %v827_v10 }
 0x2bb   : > { %v790_v18 = vpop.f32.mrf.mxu1  ;;  %v831_v19 = vpop.f32.mrf.mxu0 }
 0x2bc   : > { %1535 = vst [vmem:[%s563_s30] sm:$0xff] %v1534_v16   ;;  %1561 = vst [vmem:[%s563_s30 + $0x8] sm:$0xff] %v1539_v17  }
 0x2bd   : > { %v948_v24 = vpop.f32.mrf.mxu1  ;;  %v989_v25 = vpop.f32.mrf.mxu0 }
 0x2be   : > { %1956 = shalt.err (!%p1953_p3)
}
 0x2bf   : > { %s1957_s11 = scalar_lea.hbm %s2409_s16, 256  ;;  %s1961_s3 = scalar_lea.hbm %s2553_s10, 512 }
 0x2c0   : > { %p1958_p7 = scmp.ne.s32.totalorder %s2409_s16, %s1957_s11  ;;  %p1962_p11 = scmp.lt.s32.totalorder %s2409_s16, %s2553_s10 }
 0x2c1   : > { %p1963_p12 = scmp.lt.s32.totalorder %s1961_s3, %s1957_s11 }
 0x2c2   : > { %p1959_p10 = pnand %p1958_p7, %p2297_p9 }
 0x2c3   : > { %p1964_p6 = por %p1963_p12, %p1962_p11 }
 0x2c4   : > { %p1960_p8 = pneg %p1959_p10 }
 0x2c6   : > { %p1965_p13 = pnand %p1964_p6, %p1960_p8 }
 0x2c8   : > { %1968 = shalt.err (!%p1965_p13)
}
 0x2c9   : > { %s2113_s2 = smov 64   ;;  %s2114_s14 = smov 4   ;;  %v950_v26 = vpop.f32.mrf.mxu1  ;;  %v991_v27 = vpop.f32.mrf.mxu0  ;;  %v949_v28 = vadd.f32 %v948_v24, %v857_v20  ;;  %v990_v29 = vadd.f32 %v989_v25, %v865_v21  ;;  %v1015_v34 = vld [vmem:[%s2552_s9] sm:$0xf] }
 0x2ca   : > { %1599 = dma.vmem_to_hbm [thread:$0]  (%p2297_p9), %s2400_s17, 256, %s2409_s16, %s1171_s29, %s2113_s2, %s2113_s2, %s2114_s14   ;;  %v951_v30 = vadd.f32 %v950_v26, %v861_v22  ;;  %v992_v31 = vadd.f32 %v991_v27, %v869_v23  ;;  %v1020_v39 = vrot.slane %v1015_v34, %v2378_v60  ;;  %v1028_v40 = vrot.slane %v1015_v34, %v2380_v61 }
 0x2cb   : > { %s570_s28 = scalar_lea.vmem [#allocation15], %s2390_s8  ;;  %v952_v32 = vpop.f32.mrf.mxu1  ;;  %v993_v33 = vpop.f32.mrf.mxu0  ;;  %s2592_s16 = sld [smem:[#allocation33_spill]]  ;;  %v1024_v41 = vrot.slane %v1015_v34, %v2382_v62  ;;  %v1032_v42 = vrot.slane %v1015_v34, %v2384_v63 }
 0x2cc   : > { %s1212_s13 = sshll.u32 %s570_s28, 4  ;;  %v1544_v35 = vpack.c.bf16 %v951_v30, %v949_v28  ;;  %v1549_v36 = vpack.c.bf16 %v992_v31, %v990_v29  ;;  %s2459_s20 = scalar_lea.sflag [#allocation16], %s498_s6  ;;  %s2442_s13 = int_to_ptr.vmem [resolvable:$true] %s1212_s13 }
 0x2cd   : > { %v953_v37 = vpop.f32.mrf.mxu1  ;;  %v994_v38 = vpop.f32.mrf.mxu0  ;;  %s1969_s30 = scalar_lea.vmem %s2442_s13, 256  ;;  %s2115_s3 = smov [#allocation15]  }
 0x2ce   : > { %1545 = vst [vmem:[%s570_s28] sm:$0xff] %v1544_v35   ;;  %1562 = vst [vmem:[%s570_s28 + $0x8] sm:$0xff] %v1549_v36   ;;  %p1970_p0 = scmp.ne.s32.totalorder %s2442_s13, %s1969_s30  ;;  %s1973_s4 = sshll.u32 %s2115_s3, 4  ;;  %s1974_s4 = int_to_ptr.vmem [resolvable:$false] %s1973_s4 }
 0x2cf   : > { %v1111_v43 = vpop.f32.mrf.mxu1  ;;  %v1152_v44 = vpop.f32.mrf.mxu0  ;;  %s1975_s24 = scalar_lea.vmem %s1974_s4, 512  ;;  %p1976_p4 = scmp.lt.s32.totalorder %s2442_s13, %s1974_s4 }
 0x2d0   : > { %p1971_p5 = pnand %p1970_p0, %p2297_p9  ;;  %p1977_p3 = scmp.lt.s32.totalorder %s1975_s24, %s1969_s30 }
 0x2d1   : > { %s2451_s29 = scalar_lea.hbm %s2592_s16, %s2398_s19 }
 0x2d2   : > { %p1972_p2 = pneg %p1971_p5  ;;  %p1978_p7 = por %p1977_p3, %p1976_p4 }
 0x2d4   : > { %p1979_p10 = pnand %p1978_p7, %p1972_p2 }
 0x2d6   : > { %1982 = shalt.err (!%p1979_p10)
}
 0x2d7   : > { %s1983_s27 = scalar_lea.hbm %s2451_s29, 256  ;;  %s1987_s12 = scalar_lea.hbm %s2592_s16, 512 }
 0x2d8   : > { %p1984_p8 = scmp.ne.s32.totalorder %s2451_s29, %s1983_s27  ;;  %p1988_p6 = scmp.lt.s32.totalorder %s2451_s29, %s2592_s16 }
 0x2d9   : > { %p1989_p13 = scmp.lt.s32.totalorder %s1987_s12, %s1983_s27 }
 0x2da   : > { %p1985_p11 = pnand %p1984_p8, %p2297_p9 }
 0x2db   : > { %p1990_p0 = por %p1989_p13, %p1988_p6 }
 0x2dc   : > { %p1986_p12 = pneg %p1985_p11 }
 0x2de   : > { %p1991_p5 = pnand %p1990_p0, %p1986_p12 }
 0x2e0   : > { %1994 = shalt.err (!%p1991_p5)
}
 0x2e1   : > { %1600 = dma.vmem_to_hbm [thread:$0]  (%p2297_p9), %s2442_s13, 256, %s2451_s29, %s2459_s20, %s2113_s2, %s2113_s2, %s2114_s14   ;;  %v1113_v45 = vpop.f32.mrf.mxu1  ;;  %v1154_v46 = vpop.f32.mrf.mxu0  ;;  %v1112_v47 = vadd.f32 %v1111_v43, %v1020_v39  ;;  %v1153_v48 = vadd.f32 %v1152_v44, %v1028_v40 }
 0x2e2   : > { %s577_s17 = scalar_lea.vmem [#allocation17], %s2390_s8  ;;  %v1114_v49 = vadd.f32 %v1113_v45, %v1024_v41  ;;  %v1155_v50 = vadd.f32 %v1154_v46, %v1032_v42  ;;  %s2593_s29 = sld [smem:[#allocation34_spill]] }
 0x2e3   : > { %s1229_s30 = sshll.u32 %s577_s17, 4  ;;  %v1115_v51 = vpop.f32.mrf.mxu1  ;;  %v1156_v52 = vpop.f32.mrf.mxu0  ;;  %s2116_s24 = smov [#allocation17]   ;;  %s2486_s30 = int_to_ptr.vmem [resolvable:$true] %s1229_s30 }
 0x2e4   : > { %v1554_v53 = vpack.c.bf16 %v1114_v49, %v1112_v47  ;;  %v1559_v54 = vpack.c.bf16 %v1155_v50, %v1153_v48  ;;  %s1995_s4 = scalar_lea.vmem %s2486_s30, 256  ;;  %s1999_s27 = sshll.u32 %s2116_s24, 4  ;;  %s2000_s27 = int_to_ptr.vmem [resolvable:$false] %s1999_s27 }
 0x2e5   : > { %v1116_v55 = vpop.f32.mrf.mxu1  ;;  %v1157_v56 = vpop.f32.mrf.mxu0  ;;  %p1996_p2 = scmp.ne.s32.totalorder %s2486_s30, %s1995_s4  ;;  %s2001_s6 = scalar_lea.vmem %s2000_s27, 512 }
 0x2e6   : > { %1555 = vst [vmem:[%s577_s17] sm:$0xff] %v1554_v53   ;;  %1563 = vst [vmem:[%s577_s17 + $0x8] sm:$0xff] %v1559_v54   ;;  %p2002_p7 = scmp.lt.s32.totalorder %s2486_s30, %s2000_s27  ;;  %p2003_p10 = scmp.lt.s32.totalorder %s2001_s6, %s1995_s4 }
 0x2e7   : > { %p1997_p4 = pnand %p1996_p2, %p2297_p9 }
 0x2e8   : > { %s2492_s8 = scalar_lea.hbm %s2593_s29, %s2398_s19  ;;  %p2004_p8 = por %p2003_p10, %p2002_p7 }
 0x2e9   : > { %p1998_p3 = pneg %p1997_p4 }
 0x2eb   : > { %p2005_p11 = pnand %p2004_p8, %p1998_p3 }
 0x2ed   : > { %2008 = shalt.err (!%p2005_p11)
}
 0x2ee   : > { %s2009_s19 = scalar_lea.hbm %s2492_s8, 256  ;;  %s2013_s11 = scalar_lea.hbm %s2593_s29, 512 }
 0x2ef   : > { %p2010_p12 = scmp.ne.s32.totalorder %s2492_s8, %s2009_s19  ;;  %p2014_p0 = scmp.lt.s32.totalorder %s2492_s8, %s2593_s29 }
 0x2f0   : > { %p2015_p5 = scmp.lt.s32.totalorder %s2013_s11, %s2009_s19 }
 0x2f1   : > { %p2011_p6 = pnand %p2010_p12, %p2297_p9 }
 0x2f2   : > { %p2016_p2 = por %p2015_p5, %p2014_p0 }
 0x2f3   : > { %p2012_p13 = pneg %p2011_p6 }
 0x2f5   : > { %p2017_p4 = pnand %p2016_p2, %p2012_p13 }
 0x2f7   : > { %2020 = shalt.err (!%p2017_p4)
}
 0x2f8   : > { %1601 = dma.vmem_to_hbm [thread:$0]  (%p2297_p9), %s2486_s30, 256, %s2492_s8, %s2459_s20, %s2113_s2, %s2113_s2, %s2114_s14  }
 0x2f9 PF: > { %s1244_s3 = sand.u32 1, %s2075_s21   ;;  %p2594_p3 = scmp.ge.s32.totalorder %s2095_s26, 2 }
 0x2fa   : > { %s1245_s13 = scalar_lea.sflag [#allocation4], %s1244_s3 }
 0x2fb   : > { %p1629_p7 = pnand %p2594_p3, %p2305_p1 }
 0x2fd   : > { %p1630_p10 = pneg %p1629_p7 }
 0x2ff   : > { %2066 = dma.done.wait (%p1630_p10), %s1245_s13, 256  }
 0x300   : > { %2068 = vsyncadd (%p1630_p10), %s1245_s13, 4294967040  ;;  %s2595_s18 = sadd.s32 4294967294, %s2095_s26  }
 0x301   : > { %s1253_s4 = sand.u32 1, %s2595_s18  }
 0x302   : > { %s1254_s24 = scalar_lea.sflag [#allocation16], %s1253_s4 }
 0x303   : > { %2070 = dma.done.wait (%p1630_p10), %s1254_s24, 512  }
 0x304   : > { %2072 = vsyncadd (%p1630_p10), %s1254_s24, 4294966784  ;;  %s37_s26 = sadd.s32 1, %s2095_s26   ;;  %s2596_s2 = sld [smem:[#allocation27_spill]] }
 0x305   : > { %p34_p9 = scmp.ge.s32.totalorder %s37_s26, 4   ;;  %s2597_s24 = sld [smem:[#allocation25_spill]] }
 0x306   : > { %s2598_s25 = sld [smem:[#allocation26_spill]]  ;;  %s2599_s21 = smov %s2079_s22 }
 0x307   : > { %s2600_s22 = smov %s2083_s23  ;;  %36 = sbr.rel (!%p34_p9) target bundleno = 20 (0x14), region = 179 }
 0x30a   : > { %s2601_s23 = smov %s2596_s2 }
 0x30c   :  { %1268 = vsyncpa [#allocation3], 1 }
 0x30d   :  { %1270 = vsyncpa [#allocation3 + $0x1], 1 }
 0x30e   :  { %1271 = vsyncpa [#allocation6], 1 }
 0x30f   :  { %1273 = vsyncpa [#allocation6 + $0x1], 1 }
 0x310   :  { %1274 = vsyncpa [#allocation9], 1 }
 0x311   :  { %1275 = vsyncpa [#allocation12], 1 }
 0x312   :  { %1276 = vsyncpa [#allocation4], 1 }
 0x313   :  { %1278 = vsyncpa [#allocation4 + $0x1], 1 }
 0x314   :  { %1279 = vsyncpa [#allocation16], 1 }
 0x315   :  { %1281 = vsyncpa [#allocation16 + $0x1], 1 }

// kernel: tpu_custom_call.1
= control target key start
LH: loop header
LB: loop body
LE: loop exit
PB: predicated region body
PF: predicated region fallthrough
CT: control target
= control target key end

     0   :  { %s2543_s0 = inlined_call_operand.hbm [shape: f32[2,8,32], index: 0, kind: input, shape index: {}]   ;;  %s2544_s1 = inlined_call_operand.hbm [shape: f32[2,8,32], index: 1, kind: input, shape index: {}]   ;;  %s2545_s2 = inlined_call_operand.hbm [shape: bf16[32,64], index: 2, kind: input, shape index: {}]   ;;  %s2546_s3 = inlined_call_operand.hbm [shape: f32[1,64], index: 3, kind: input, shape index: {}]   ;;  %s2547_s4 = inlined_call_operand.hbm [shape: bf16[32,512], index: 4, kind: input, shape index: {}]   ;;  %s2548_s5 = inlined_call_operand.vmem [shape: f32[1,512], index: 5, kind: input, shape index: {}]   ;;  %s2549_s6 = inlined_call_operand.hbm [shape: bf16[32,512], index: 6, kind: input, shape index: {}]   ;;  %s2550_s7 = inlined_call_operand.vmem [shape: f32[1,512], index: 7, kind: input, shape index: {}]   ;;  %s2551_s8 = inlined_call_operand.hbm [shape: bf16[32,512], index: 8, kind: input, shape index: {}]   ;;  %s2552_s9 = inlined_call_operand.vmem [shape: f32[1,512], index: 9, kind: input, shape index: {}]   ;;  %s2553_s10 = inlined_call_operand.hbm [shape: bf16[2,4,8,128], index: 10, kind: output, shape index: {0}]   ;;  %s2554_s11 = inlined_call_operand.hbm [shape: bf16[2,4,8,128], index: 11, kind: output, shape index: {1}]   ;;  %s2555_s12 = inlined_call_operand.hbm [shape: bf16[2,4,8,128], index: 12, kind: output, shape index: {2}]  }
   0x1   :  { %2562 = sst [smem:[#allocation28_spill]] %s2545_s2 }
   0x2   :  { %2563 = sst [smem:[#allocation29_spill]] %s2546_s3 }
   0x3   :  { %2564 = sst [smem:[#allocation30_spill]] %s2547_s4 }
   0x4   :  { %2565 = sst [smem:[#allocation31_spill]] %s2549_s6 }
   0x5   :  { %2566 = sst [smem:[#allocation32_spill]] %s2551_s8 }
   0x6   :  { %2567 = sst [smem:[#allocation33_spill]] %s2554_s11 }
   0x7   :  { %2568 = sst [smem:[#allocation34_spill]] %s2555_s12 }
   0x8   :  { %18 = vsyncpa [#allocation3], 0 }
   0x9   :  { %20 = vsyncpa [#allocation3 + $0x1], 0 }
   0xa   :  { %21 = vsyncpa [#allocation6], 0 }
   0xb   :  { %23 = vsyncpa [#allocation6 + $0x1], 0 }
   0xc   :  { %24 = vsyncpa [#allocation9], 0 }
   0xd   :  { %25 = vsyncpa [#allocation12], 0 }
   0xe   :  { %26 = vsyncpa [#allocation4], 0 }
   0xf   :  { %28 = vsyncpa [#allocation4 + $0x1], 0 }
  0x10   :  { %29 = vsyncpa [#allocation16], 0 }
  0x11   :  { %31 = vsyncpa [#allocation16 + $0x1], 0  ;;  %s2182_s21 = smov 0   ;;  %s2184_s22 = smov 0  }
  0x12   :  { %s2186_s23 = smov 0   ;;  %s2188_s24 = smov 0  }
  0x13   :  { %s2190_s25 = smov 0   ;;  %s2192_s26 = smov 0  }
  0x14 LB: > { %2569 = sst [smem:[#allocation25_spill]] %s2091_s25  ;;  %s2213_s27 = sadd.s32 4294967295, %s2095_s26   ;;  %s2095_s26 = sphi %s2192_s26, %s37_s26   ;;  %s2091_s25 = sphi %s2190_s25, %s2598_s25   ;;  %s2087_s24 = sphi %s2188_s24, %s2597_s24   ;;  %s2083_s23 = sphi %s2186_s23, %s2601_s23   ;;  %s2079_s22 = sphi %s2184_s22, %s2600_s22   ;;  %s2075_s21 = sphi %s2182_s21, %s2599_s21  }
  0x15   : > { %p1451_p0 = scmp.ge.s32.totalorder %s2095_s26, 1  ;;  %p2558_p1 = scmp.eq.s32.totalorder %s2213_s27, 0 }
  0x16   : > { %p362_p2 = scmp.lt.s32.totalorder %s2095_s26, 3  ;;  %s2097_s29 = smov [#allocation7]  }
  0x17   : > { %s374_s30 = sshll.u32 %s2097_s29, 4  ;;  %s2098_s14 = smov [#allocation8]   ;;  %s375_s30 = int_to_ptr.vmem [resolvable:$true] %s374_s30 }
  0x18   : > { %p2218_p3 = pnand %p1451_p0, %p362_p2  ;;  %s388_s15 = sshll.u32 %s2098_s14, 4  ;;  %s389_s15 = int_to_ptr.vmem [resolvable:$true] %s388_s15 }
  0x19   : > { %s1768_s17 = scalar_lea.vmem %s375_s30, 256  ;;  %p1776_p11 = scmp.lt.s32.totalorder %s375_s30, %s375_s30 }
  0x1a   : > { %p1605_p4 = pneg %p2218_p3  ;;  %p1769_p8 = scmp.ne.s32.totalorder %s375_s30, %s1768_s17 }
  0x1b   : > { %p1777_p12 = scmp.lt.s32.totalorder %s1768_s17, %s1768_s17 }
  0x1c   : > { %p2227_p6 = pnand %p1605_p4, %p2558_p1 }
  0x1d   : > { %p1778_p13 = por %p1777_p12, %p1776_p11 }
  0x1e   : > { %p2233_p7 = pneg %p2227_p6 }
  0x20   : > { %p1771_p9 = pnand %p1769_p8, %p2233_p7 }
  0x22   : > { %p1772_p10 = pneg %p1771_p9 }
  0x24   : > { %p1779_p0 = pnand %p1778_p13, %p1772_p10 }
  0x26   : > { %1782 = shalt.err (!%p1779_p0)
}
  0x27   : > { %s2099_s18 = smov 64   ;;  %s2100_s19 = smov 4  }
  0x28   : > { %s2573_s2 = sld [smem:[#allocation28_spill]]  ;;  %s1794_s14 = scalar_lea.vmem %s389_s15, 16 }
  0x29   : > { %p1795_p2 = scmp.ne.s32.totalorder %s389_s15, %s1794_s14  ;;  %s1801_s12 = scalar_lea.vmem %s389_s15, 32 }
  0x2a   : > { %p1802_p9 = scmp.lt.s32.totalorder %s389_s15, %s389_s15  ;;  %p1803_p5 = scmp.lt.s32.totalorder %s1801_s12, %s1794_s14 }
  0x2b   : > { %p1797_p4 = pnand %p1795_p2, %p2233_p7 }
  0x2c   : > { %p1804_p11 = por %p1803_p5, %p1802_p9 }
  0x2d   : > { %p1798_p8 = pneg %p1797_p4 }
  0x2e   : > { %1608 = dma.hbm_to_vmem [thread:$0]  (!%p2227_p6), %s2573_s2, 256, %s375_s30, [#allocation6], %s2099_s18, %s2099_s18, %s2100_s19  }
  0x2f   : > { %p1805_p10 = pnand %p1804_p11, %p1798_p8 }
  0x31   : > { %1808 = shalt.err (!%p1805_p10)
}
  0x32   : > { %s2574_s3 = sld [smem:[#allocation29_spill]]  ;;  %s2101_s20 = smov [#allocation11]  }
  0x33   : > { %s414_s30 = sshll.u32 %s2101_s20, 4  ;;  %s2102_s18 = smov [#allocation10]   ;;  %s415_s30 = int_to_ptr.vmem [resolvable:$true] %s414_s30 }
  0x34   : > { %s398_s19 = sshll.u32 %s2102_s18, 4  ;;  %s1820_s29 = scalar_lea.vmem %s415_s30, 1024  ;;  %s399_s19 = int_to_ptr.vmem [resolvable:$true] %s398_s19 }
  0x35   : > { %p1821_p12 = scmp.ne.s32.totalorder %s415_s30, %s1820_s29  ;;  %p1828_p0 = scmp.lt.s32.totalorder %s415_s30, %s415_s30 }
  0x36   : > { %p1829_p2 = scmp.lt.s32.totalorder %s1820_s29, %s1820_s29 }
  0x37   : > { %p1823_p13 = pnand %p1821_p12, %p2233_p7 }
  0x38   : > { %1611 = dma.hbm_to_vmem [thread:$0]  (!%p2227_p6), %s2574_s3, 16, %s389_s15, [#allocation9]  }
  0x39   : > { %p1824_p5 = pneg %p1823_p13  ;;  %p1830_p4 = por %p1829_p2, %p1828_p0 }
  0x3b   : > { %p1831_p8 = pnand %p1830_p4, %p1824_p5 }
  0x3d   : > { %1834 = shalt.err (!%p1831_p8)
}
  0x3e   : > { %s2103_s12 = smov 256   ;;  %s2104_s11 = smov 16  }
  0x3f   : > { %s2575_s6 = sld [smem:[#allocation31_spill]]  ;;  %s1846_s17 = scalar_lea.vmem %s399_s19, 1024 }
  0x40   : > { %p1847_p9 = scmp.ne.s32.totalorder %s399_s19, %s1846_s17  ;;  %p1854_p12 = scmp.lt.s32.totalorder %s399_s19, %s399_s19 }
  0x41   : > { %p1855_p13 = scmp.lt.s32.totalorder %s1846_s17, %s1846_s17 }
  0x42   : > { %p1849_p11 = pnand %p1847_p9, %p2233_p7 }
  0x43   : > { %p1856_p1 = por %p1855_p13, %p1854_p12 }
  0x44   : > { %p1850_p10 = pneg %p1849_p11 }
  0x45   : > { %1617 = dma.hbm_to_vmem [thread:$0]  (!%p2227_p6), %s2575_s6, 1024, %s415_s30, [#allocation12], %s2103_s12, %s2103_s12, %s2104_s11  }
  0x46   : > { %p1857_p0 = pnand %p1856_p1, %p1850_p10 }
  0x48   : > { %1860 = shalt.err (!%p1857_p0)
}
  0x49   : > { %s2576_s4 = sld [smem:[#allocation30_spill]]  ;;  %s2105_s29 = smov [#allocation13]  }
  0x4a   : > { %s430_s15 = sshll.u32 %s2105_s29, 4  ;;  %s431_s15 = int_to_ptr.vmem [resolvable:$true] %s430_s15 }
  0x4b   : > { %s1872_s30 = scalar_lea.vmem %s431_s15, 1024  ;;  %p1880_p8 = scmp.lt.s32.totalorder %s431_s15, %s431_s15 }
  0x4c   : > { %p1873_p5 = scmp.ne.s32.totalorder %s431_s15, %s1872_s30  ;;  %p1881_p9 = scmp.lt.s32.totalorder %s1872_s30, %s1872_s30 }
  0x4e   : > { %p1875_p2 = pnand %p1873_p5, %p2233_p7  ;;  %p1882_p11 = por %p1881_p9, %p1880_p8 }
  0x4f   : > { %1614 = dma.hbm_to_vmem [thread:$0]  (!%p2227_p6), %s2576_s4, 1024, %s399_s19, [#allocation9], %s2103_s12, %s2103_s12, %s2104_s11  }
  0x50   : > { %p1876_p4 = pneg %p1875_p2 }
  0x52   : > { %p1883_p1 = pnand %p1882_p11, %p1876_p4 }
  0x54   : > { %1886 = shalt.err (!%p1883_p1)
}
  0x55   : > { %s2577_s8 = sld [smem:[#allocation32_spill]]  ;;  %s2559_s16 = sadd.s32 4294967294, %s2095_s26  }
  0x56   : > { %s49_s13 = sadd.s32 1, %s2091_s25  ;;  %s58_s19 = sadd.s32 1, %s2083_s23 }
  0x57   : > { %p51_p7 = scmp.ge.s32.totalorder %s49_s13, 2  ;;  %p65_p10 = scmp.ne.s32.totalorder %s2083_s23, %s2079_s22 }
  0x58   : > { %p66_p12 = scmp.eq.s32.totalorder %s2095_s26, 0  ;;  %p71_p13 = scmp.ne.s32.totalorder %s2079_s22, %s2075_s21 }
  0x59   : > { %s2603_s13 = smov (%p51_p7, %s49_s13), 0  ;;  %p2580_p5 = scmp.eq.s32.totalorder %s2213_s27, 0 }
  0x5a   : > { %2578 = sst [smem:[#allocation26_spill]] %s2603_s13  ;;  %p2282_p0 = por %p66_p12, %p65_p10 }
  0x5b   : > { %1620 = dma.hbm_to_vmem [thread:$0]  (!%p2227_p6), %s2577_s8, 1024, %s431_s15, [#allocation12], %s2103_s12, %s2103_s12, %s2104_s11  }
  0x5c   : > { %p2288_p6 = por %p2580_p5, %p71_p13  ;;  %s53_s11 = ssub.s32 %s2091_s25, %s2603_s13 }
  0x5d   : > { %p293_p2 = scmp.eq.s32.totalorder %s2213_s27, 1  ;;  %p56_p4 = scmp.eq.s32.totalorder %s53_s11, 0 }
  0x5e   : > { %p299_p8 = scmp.eq.s32.totalorder %s2559_s16, 1  ;;  %p1643_p11 = scmp.lt.s32.totalorder %s2095_s26, 2 }
  0x5f   : > { %p2297_p9 = por %p293_p2, %p65_p10  ;;  %s447_s30 = sand.u32 1, %s2083_s23  }
  0x60   : > { %s2303_s29 = scalar_select %p56_p4, %s2083_s23, %s58_s19  }
  0x61   : > { %p2305_p1 = por %p299_p8, %p71_p13  ;;  %s1458_s14 = sshll.u32 %s447_s30, 3 }
  0x62   : > { %2583 = sst [smem:[#allocation27_spill]] %s2303_s29  ;;  %s1459_s17 = sshll.u32 %s2091_s25, 7 }
  0x63   : > { %s457_s11 = scalar_lea.hbm %s2543_s0, %s1459_s17  ;;  %s451_s4 = scalar_lea.vmem [#allocation2], %s1458_s14 }
  0x64   : > { %s459_s16 = sshll.u32 %s451_s4, 4  ;;  %p2316_p7 = pnand %p1643_p11, %p2282_p0  ;;  %s460_s16 = int_to_ptr.vmem [resolvable:$true] %s459_s16 }
  0x65   : > { %s2323_s13 = scalar_lea.hbm %s2544_s1, %s1459_s17  ;;  %s466_s25 = sand.u32 1, %s2095_s26  }
  0x66   : > { %s448_s29 = scalar_lea.sflag [#allocation3], %s447_s30  ;;  %p1889_p10 = pneg %p2316_p7 }
  0x67   : > { %s1900_s2 = scalar_lea.vmem %s460_s16, 128  ;;  %s2106_s3 = smov [#allocation2]  }
  0x68   : > { %p1901_p12 = scmp.ne.s32.totalorder %s460_s16, %s1900_s2  ;;  %s1905_s4 = sshll.u32 %s2106_s3, 4  ;;  %s1906_s4 = int_to_ptr.vmem [resolvable:$false] %s1905_s4 }
  0x69   : > { %s1907_s20 = scalar_lea.vmem %s1906_s4, 256  ;;  %p1908_p5 = scmp.lt.s32.totalorder %s460_s16, %s1906_s4 }
  0x6a   : > { %p1903_p13 = pnand %p1901_p12, %p1889_p10  ;;  %p1909_p2 = scmp.lt.s32.totalorder %s1907_s20, %s1900_s2 }
  0x6c   : > { %p1904_p0 = pneg %p1903_p13  ;;  %p1910_p4 = por %p1909_p2, %p1908_p5 }
  0x6e   : > { %p1911_p8 = pnand %p1910_p4, %p1904_p0 }
  0x70   : > { %1914 = shalt.err (!%p1911_p8)
}
  0x71   : > { %1624 = dma.hbm_to_vmem [thread:$0]  (!%p2316_p7), %s457_s11, 128, %s460_s16, %s448_s29  }
  0x72   : > { %s470_s8 = scalar_lea.vmem [#allocation5], %s1458_s14  ;;  %s467_s17 = scalar_lea.sflag [#allocation6], %s466_s25 }
  0x73   : > { %s478_s30 = sshll.u32 %s470_s8, 4  ;;  %s2107_s3 = smov [#allocation5]   ;;  %s479_s30 = int_to_ptr.vmem [resolvable:$true] %s478_s30 }
  0x74   : > { %s1928_s19 = scalar_lea.vmem %s479_s30, 128  ;;  %s1933_s4 = sshll.u32 %s2107_s3, 4  ;;  %s1934_s4 = int_to_ptr.vmem [resolvable:$false] %s1933_s4 }
  0x75   : > { %p1929_p11 = scmp.ne.s32.totalorder %s479_s30, %s1928_s19  ;;  %s1935_s2 = scalar_lea.vmem %s1934_s4, 256 }
  0x76   : > { %p1936_p0 = scmp.lt.s32.totalorder %s479_s30, %s1934_s4  ;;  %p1937_p5 = scmp.lt.s32.totalorder %s1935_s2, %s1928_s19 }
  0x77   : > { %p1931_p12 = pnand %p1929_p11, %p1889_p10 }
  0x78   : > { %p1938_p2 = por %p1937_p5, %p1936_p0 }
  0x79   : > { %p1932_p13 = pneg %p1931_p12 }
  0x7b   : > { %p1939_p4 = pnand %p1938_p2, %p1932_p13 }
  0x7d   : > { %1942 = shalt.err (!%p1939_p4)
}
  0x7e   : > { %1627 = dma.hbm_to_vmem [thread:$0]  (!%p2316_p7), %s2323_s13, 128, %s479_s30, %s467_s17  }
  0x7f   : > { %487 = sbr.rel (%p2218_p3) target bundleno = 761 (0x2f9), region = 60  ;;  %s2342_s25 = sand.u32 (!%p2218_p3), 1, %s2079_s22  }
  0x80   : > { %s1463_s16 = sshll.u32 (!%p2218_p3), %s2342_s25, 3  ;;  %s490_s29 = scalar_lea.sflag (!%p2218_p3), [#allocation3], %s2342_s25 }
  0x81   : > { %s493_s14 = scalar_lea.vmem (!%p2218_p3), [#allocation2], %s1463_s16 }
  0x84   : > { %2046 = dma.done.wait (%p2288_p6), %s490_s29, 128  }
  0x85   : > { %2048 = vsyncadd (%p2288_p6), %s490_s29, 4294967168  ;;  %s498_s6 = sand.u32 1, %s2213_s27   ;;  %s502_s13 = scalar_lea.vmem [#allocation5], %s1463_s16 }
  0x86   : > { %s499_s28 = scalar_lea.sflag [#allocation6], %s498_s6 }
  0x87   : > { %2050 = dma.done.wait (%p2288_p6), %s499_s28, 128  }
  0x88   : > { %2052 = vsyncadd (%p2288_p6), %s499_s28, 4294967168  ;;  %p2586_p3 = scmp.eq.s32.totalorder %s2213_s27, 0 }
  0x8a   : > { %2054 = dma.done.wait (%p2586_p3), [#allocation6], 256   ;;  %p2587_p7 = pmov %p2586_p3 }
  0x8b   : > { %p2588_p10 = pmov %p2586_p3 }
  0x8c   : > { %2056 = vsyncadd (%p2587_p7), [#allocation6], 4294967040 }
  0x8d   : > { %2058 = dma.done.wait (%p2588_p10), [#allocation9], 1040   ;;  %p2589_p8 = pmov %p2586_p3 }
  0x8e   : > { %p2590_p11 = pmov %p2586_p3 }
  0x8f   : > { %2060 = vsyncadd (%p2589_p8), [#allocation9], 4294966256 }
  0x90   : > { %2062 = dma.done.wait (%p2590_p11), [#allocation12], 2048   ;;  %p2591_p12 = pmov %p2586_p3 }
  0x91   : > { %v2108_v0 = vmov 0.0   ;;  %vm2109_vm0 = vmmov 0   ;;  %vm612_vm1 = vcmask 261120   ;;  %v579_v1 = vld [vmem:[%s493_s14] sm:$0xff]  ;;  %v580_v5 = vld [vmem:[%s502_s13] sm:$0xff]  ;;  %v2110_v26 = vmov 0  }
  0x92   : > { %2064 = vsyncadd (%p2591_p12), [#allocation12], 4294965248  ;;  %1567 = vmatprep.subr.bf16.mxu0 %v2108_v0  ;;  %1571 = vmatprep.mubr.msk.bf16.mxu0 %vm2109_vm0, %v2108_v0  ;;  %v656_v2 = vsel %vm612_vm1, %v579_v1, 0.0  ;;  %v1713_v3 = vld [vmem:[#allocation7 + $0x8] sm:$0xff]   ;;  %v1714_v4 = vld [vmem:[#allocation7] sm:$0xff]   ;;  %s2111_s12 = smov 96   ;;  %v688_v58 = vlaneseq }
  0x93   : > { %657 = vadd.xlane.f32.xlu0 %v656_v2  ;;  %1568 = vmatpush3.bf16.msra.mxu0 %v1713_v3  ;;  %v1473_v6 = vmul.f32 -1.442695, %v580_v5  ;;  %v1715_v17 = vld [vmem:[#allocation10 + $0x24] ss:$16 sps:$4 sm:$0xff]   ;;  %v1717_v18 = vld [vmem:[#allocation10 + $0x28] ss:$16 sps:$4 sm:$0xff]  }
  0x94   : > { %1569 = vmatprep.subr.bf16.mxu0 %v2108_v0  ;;  %v1719_v19 = vld [vmem:[#allocation10 + $0x2c] ss:$16 sps:$4 sm:$0xff]   ;;  %v1720_v20 = vld [vmem:[#allocation10 + $0x20] ss:$16 sps:$4 sm:$0xff]   ;;  %763 = vmatprep.subr.bf16.mxu1 %v1715_v17  ;;  %v1721_v21 = vld [vmem:[#allocation10 + $0x4] ss:$16 sps:$4 sm:$0xff]  }
  0x95   : > { %1751 = vpow2.f32 %v1473_v6  ;;  %764 = vmatpush1.bf16.msra.mxu1 %v1720_v20  ;;  %v1725_v22 = vld [vmem:[#allocation10 + $0xc] ss:$16 sps:$4 sm:$0xff]   ;;  %v1723_v23 = vld [vmem:[#allocation10 + $0x8] ss:$16 sps:$4 sm:$0xff]   ;;  %v1726_v24 = vld [vmem:[#allocation10] ss:$16 sps:$4 sm:$0xff]   ;;  %783 = vmatprep.mubr.bf16.mxu1 %v2110_v26 }
  0x96   : > { %765 = vmatprep.subr.bf16.mxu1 %v1721_v21  ;;  %v1729_v25 = vld [vmem:[#allocation11 + $0x24] ss:$16 sps:$4 sm:$0xff]   ;;  %v1732_v27 = vld [vmem:[#allocation11 + $0x2c] ss:$16 sps:$4 sm:$0xff]   ;;  %v1727_v43 = vld [vmem:[#allocation11 + $0x20] ss:$16 sps:$4 sm:$0xff]  }
  0x97   : > { %1570 = vmatpush3.bf16.msra.mxu0 %v1714_v4  ;;  %v1474_v28 = vld [vmem:[#allocation8] ss:$0 sm:$0xff]  ;;  %v1730_v44 = vld [vmem:[#allocation11 + $0x28] ss:$16 sps:$4 sm:$0xff]   ;;  %v1735_v46 = vld [vmem:[#allocation11 + $0x4] ss:$16 sps:$4 sm:$0xff]  }
  0x98   : > { %804 = vmatprep.subr.bf16.mxu0 %v1719_v19  ;;  %v1738_v47 = vld [vmem:[#allocation11 + $0xc] ss:$16 sps:$4 sm:$0xff]   ;;  %v1733_v48 = vld [vmem:[#allocation11] ss:$16 sps:$4 sm:$0xff]   ;;  %v1736_v49 = vld [vmem:[#allocation11 + $0x8] ss:$16 sps:$4 sm:$0xff]  }
  0x99   : > { %766 = vmatpush1.bf16.msra.mxu1 %v1726_v24  ;;  %v1741_v50 = vld [vmem:[#allocation13 + $0x24] ss:$16 sps:$4 sm:$0xff]   ;;  %v1744_v51 = vld [vmem:[#allocation13 + $0x2c] ss:$16 sps:$4 sm:$0xff]   ;;  %v1739_v52 = vld [vmem:[#allocation13 + $0x20] ss:$16 sps:$4 sm:$0xff]  }
  0x9a   : > { %926 = vmatprep.subr.bf16.mxu1 %v1729_v25  ;;  %v1742_v53 = vld [vmem:[#allocation13 + $0x28] ss:$16 sps:$4 sm:$0xff]   ;;  %v1747_v54 = vld [vmem:[#allocation13 + $0x4] ss:$16 sps:$4 sm:$0xff]   ;;  %v1750_v55 = vld [vmem:[#allocation13 + $0xc] ss:$16 sps:$4 sm:$0xff]  }
  0x9b   : > { %v1745_v56 = vld [vmem:[#allocation13] ss:$16 sps:$4 sm:$0xff]   ;;  %v1748_v57 = vld [vmem:[#allocation13 + $0x8] ss:$16 sps:$4 sm:$0xff]   ;;  %v689_v59 = vshrl.u32 %v688_v58, 7  ;;  %s2390_s8 = sshll.u32 %s2342_s25, 4 }
  0x9c   : > { %v686_v0 = vld [vmem:[%s2548_s5] sm:$0xf]  ;;  %s563_s30 = scalar_lea.vmem [#allocation14], %s2390_s8  ;;  %s2398_s19 = sshll.u32 %s2087_s24, 8 }
  0x9d   : > { %v2378_v60 = vsub.s32 0, %v689_v59  ;;  %v2380_v61 = vsub.s32 2, %v689_v59  ;;  %v2382_v62 = vsub.s32 1, %v689_v59  ;;  %v2384_v63 = vsub.s32 3, %v689_v59  ;;  %s1195_s17 = sshll.u32 %s563_s30, 4  ;;  %s2409_s16 = scalar_lea.hbm %s2553_s10, %s2398_s19  ;;  %s2400_s17 = int_to_ptr.vmem [resolvable:$true] %s1195_s17 }
  0x9e   : > { %s1171_s29 = scalar_lea.sflag [#allocation4], %s2342_s25  ;;  %s1943_s14 = scalar_lea.vmem %s2400_s17, 256 }
  0x9f   : > { %v699_v2 = vrot.slane %v686_v0, %v2380_v61  ;;  %v695_v3 = vrot.slane %v686_v0, %v2382_v62  ;;  %v703_v4 = vrot.slane %v686_v0, %v2384_v63  ;;  %p1944_p6 = scmp.ne.s32.totalorder %s2400_s17, %s1943_s14  ;;  %s2112_s28 = smov [#allocation14]  }
  0xa0   : > { %s1947_s13 = sshll.u32 %s2112_s28, 4  ;;  %s1948_s13 = int_to_ptr.vmem [resolvable:$false] %s1947_s13 }
  0xa1   : > { %p1945_p13 = pnand %p1944_p6, %p2297_p9  ;;  %p1950_p5 = scmp.lt.s32.totalorder %s2400_s17, %s1948_s13 }
  0xa2   : > { %v1752_v7 = vpop.eup %1751 }
  0xa3   : > { %v584_v8 = vadd.f32 1.0, %v1752_v7  ;;  %p1946_p0 = pneg %p1945_p13 }
  0xa5   : > { %1753 = vrcp.f32 %v584_v8 }
  0xb2   : > { %v1754_v9 = vpop.eup %1753 }
  0xb3   : > { %v587_v10 = vmul.f32 %v1754_v9, %v580_v5 }
  0xb5   : > { %v588_v11 = vpack.c.bf16 %v587_v10, %v587_v10 }
  0xb7   : > { %1572 = vmatmul.mubr.msk.bf16.vlgmr.msra.gmra.mxu0 %vm612_vm1, %v588_v11 }
  0xb8   : > { %805 = vmatpush1.bf16.msra.mxu0 %v1717_v18  ;;  %824 = vmatprep.mubr.bf16.mxu0 %v2110_v26 }
  0xb9   : > { %806 = vmatprep.subr.bf16.mxu0 %v1725_v22 }
  0xbc   : > { %807 = vmatpush1.bf16.msra.mxu0 %v1723_v23 }
  0xbd   : > { %967 = vmatprep.subr.bf16.mxu0 %v1732_v27 }
 0x11c   : > { %v658_v12 = vpop.xlane.xlu0 %657 }
 0x11d   : > { %v660_v13 = vmul.f32 0.03125, %v658_v12 }
 0x11f   : > { %v661_v14 = vsub.f32 %v579_v1, %v660_v13  ;;  %v691_v1 = vrot.slane %v686_v0, %v2378_v60 }
 0x121   : > { %v662_v15 = vmul.f32 %v661_v14, %v661_v14 }
 0x123   : > { %v663_v16 = vsel %vm612_vm1, %v662_v15, 0.0  ;;  %v852_v15 = vld [vmem:[%s2550_s7] sm:$0xf] }
 0x124   : > { %664 = vadd.xlane.f32.xlu0 %v663_v16  ;;  %v857_v20 = vrot.slane %v852_v15, %v2378_v60  ;;  %v865_v21 = vrot.slane %v852_v15, %v2380_v61  ;;  %v861_v22 = vrot.slane %v852_v15, %v2382_v62  ;;  %v869_v23 = vrot.slane %v852_v15, %v2384_v63 }
 0x177   : > { %v650_v29 = vpop.f32.mrf.mxu0 }
 0x178   : > { %v651_v30 = vadd.f32 %v1474_v28, %v650_v29 }
 0x179   : > { %v1573_v31 = vpop.f32.mrf.mxu0 }
 0x17a   : > { %v670_v32 = vadd.f32 1.0, %v651_v30 }
 0x17b   : > { %v653_v33 = vpop.f32.mrf.mxu0 }
 0x17c   : > { %672 = vrot.lane.b32.xlu1 %v670_v32, %s2111_s12  ;;  %s1949_s12 = scalar_lea.vmem %s1948_s13, 512 }
 0x17d   : > { %v1574_v34 = vpop.f32.mrf.mxu0  ;;  %p1951_p2 = scmp.lt.s32.totalorder %s1949_s12, %s1943_s14 }
 0x17f   : > { %p1952_p4 = por %p1951_p2, %p1950_p5 }
 0x181   : > { %p1953_p3 = pnand %p1952_p4, %p1946_p0 }
 0x1ad   : > { %v665_v35 = vpop.xlane.xlu0 %664 }
 0x1ae   : > { %v666_v36 = vmul.f32 0.03125, %v665_v35 }
 0x1b0   : > { %v667_v37 = vadd.f32 1e-06, %v666_v36 }
 0x1b2   : > { %1755 = vrsqrt.f32 %v667_v37 }
 0x1bf   : > { %v1756_v38 = vpop.eup %1755 }
 0x1c0   : > { %v669_v39 = vmul.f32 %v1756_v38, %v661_v14 }
 0x1ee   : > { %v673_v40 = vpop.permute.xlu1 %672 }
 0x1ef   : > { %v675_v41 = vmul.f32 %v673_v40, %v669_v39 }
 0x1f1   : > { %v676_v42 = vadd.f32 %v675_v41, %v651_v30 }
 0x1f3   : > { %v677_v45 = vpack.c.bf16 %v676_v42, %v676_v42 }
 0x1f5   : > { %1486 = vmatmul.mubr.msk.bf16.vlgmr.msra.gmra.mxu1 %vm612_vm1, %v677_v45  ;;  %1487 = vmatmul.mubr.msk.bf16.vlgmr.msra.gmra.mxu0 %vm612_vm1, %v677_v45 }
 0x1f6   : > { %927 = vmatpush1.bf16.msra.mxu1 %v1727_v43  ;;  %968 = vmatpush1.bf16.msra.mxu0 %v1730_v44 }
 0x1f7   : > { %928 = vmatprep.subr.bf16.mxu1 %v1735_v46  ;;  %969 = vmatprep.subr.bf16.mxu0 %v1738_v47 }
 0x1f8   : > { %946 = vmatprep.mubr.bf16.mxu1 %v2110_v26  ;;  %987 = vmatprep.mubr.bf16.mxu0 %v2110_v26 }
 0x1fa   : > { %929 = vmatpush1.bf16.msra.mxu1 %v1733_v48  ;;  %970 = vmatpush1.bf16.msra.mxu0 %v1736_v49 }
 0x1fb   : > { %1089 = vmatprep.subr.bf16.mxu1 %v1741_v50  ;;  %1130 = vmatprep.subr.bf16.mxu0 %v1744_v51 }
 0x1fd   : > { %1499 = vmatmul.mubr.msk.bf16.vlgmr.msra.gmra.mxu1 %vm612_vm1, %v677_v45  ;;  %1500 = vmatmul.mubr.msk.bf16.vlgmr.msra.gmra.mxu0 %vm612_vm1, %v677_v45 }
 0x1fe   : > { %1090 = vmatpush1.bf16.msra.mxu1 %v1739_v52  ;;  %1131 = vmatpush1.bf16.msra.mxu0 %v1742_v53 }
 0x1ff   : > { %1091 = vmatprep.subr.bf16.mxu1 %v1747_v54  ;;  %1132 = vmatprep.subr.bf16.mxu0 %v1750_v55 }
 0x200   : > { %1109 = vmatprep.mubr.bf16.mxu1 %v2110_v26  ;;  %1150 = vmatprep.mubr.bf16.mxu0 %v2110_v26 }
 0x202   : > { %1092 = vmatpush1.bf16.msra.mxu1 %v1745_v56  ;;  %1133 = vmatpush1.bf16.msra.mxu0 %v1748_v57 }
 0x205   : > { %1512 = vmatmul.mubr.msk.bf16.vlgmr.msra.gmra.mxu1 %vm612_vm1, %v677_v45  ;;  %1513 = vmatmul.mubr.msk.bf16.vlgmr.msra.gmra.mxu0 %vm612_vm1, %v677_v45 }
 0x2b5   : > { %v785_v5 = vpop.f32.mrf.mxu1  ;;  %v826_v6 = vpop.f32.mrf.mxu0 }
 0x2b6   : > { %v786_v9 = vadd.f32 %v785_v5, %v691_v1  ;;  %v827_v10 = vadd.f32 %v826_v6, %v699_v2 }
 0x2b7   : > { %v787_v7 = vpop.f32.mrf.mxu1  ;;  %v828_v8 = vpop.f32.mrf.mxu0 }
 0x2b8   : > { %v788_v11 = vadd.f32 %v787_v7, %v695_v3  ;;  %v829_v12 = vadd.f32 %v828_v8, %v703_v4 }
 0x2b9   : > { %v789_v13 = vpop.f32.mrf.mxu1  ;;  %v830_v14 = vpop.f32.mrf.mxu0 }
 0x2ba   : > { %v1534_v16 = vpack.c.bf16 %v788_v11, %v786_v9  ;;  %v1539_v17 = vpack.c.bf16 %v829_v12, %v827_v10 }
 0x2bb   : > { %v790_v18 = vpop.f32.mrf.mxu1  ;;  %v831_v19 = vpop.f32.mrf.mxu0 }
 0x2bc   : > { %1535 = vst [vmem:[%s563_s30] sm:$0xff] %v1534_v16   ;;  %1561 = vst [vmem:[%s563_s30 + $0x8] sm:$0xff] %v1539_v17  }
 0x2bd   : > { %v948_v24 = vpop.f32.mrf.mxu1  ;;  %v989_v25 = vpop.f32.mrf.mxu0 }
 0x2be   : > { %1956 = shalt.err (!%p1953_p3)
}
 0x2bf   : > { %s1957_s11 = scalar_lea.hbm %s2409_s16, 256  ;;  %s1961_s3 = scalar_lea.hbm %s2553_s10, 512 }
 0x2c0   : > { %p1958_p7 = scmp.ne.s32.totalorder %s2409_s16, %s1957_s11  ;;  %p1962_p11 = scmp.lt.s32.totalorder %s2409_s16, %s2553_s10 }
 0x2c1   : > { %p1963_p12 = scmp.lt.s32.totalorder %s1961_s3, %s1957_s11 }
 0x2c2   : > { %p1959_p10 = pnand %p1958_p7, %p2297_p9 }
 0x2c3   : > { %p1964_p6 = por %p1963_p12, %p1962_p11 }
 0x2c4   : > { %p1960_p8 = pneg %p1959_p10 }
 0x2c6   : > { %p1965_p13 = pnand %p1964_p6, %p1960_p8 }
 0x2c8   : > { %1968 = shalt.err (!%p1965_p13)
}
 0x2c9   : > { %s2113_s2 = smov 64   ;;  %s2114_s14 = smov 4   ;;  %v950_v26 = vpop.f32.mrf.mxu1  ;;  %v991_v27 = vpop.f32.mrf.mxu0  ;;  %v949_v28 = vadd.f32 %v948_v24, %v857_v20  ;;  %v990_v29 = vadd.f32 %v989_v25, %v865_v21  ;;  %v1015_v34 = vld [vmem:[%s2552_s9] sm:$0xf] }
 0x2ca   : > { %1599 = dma.vmem_to_hbm [thread:$0]  (%p2297_p9), %s2400_s17, 256, %s2409_s16, %s1171_s29, %s2113_s2, %s2113_s2, %s2114_s14   ;;  %v951_v30 = vadd.f32 %v950_v26, %v861_v22  ;;  %v992_v31 = vadd.f32 %v991_v27, %v869_v23  ;;  %v1020_v39 = vrot.slane %v1015_v34, %v2378_v60  ;;  %v1028_v40 = vrot.slane %v1015_v34, %v2380_v61 }
 0x2cb   : > { %s570_s28 = scalar_lea.vmem [#allocation15], %s2390_s8  ;;  %v952_v32 = vpop.f32.mrf.mxu1  ;;  %v993_v33 = vpop.f32.mrf.mxu0  ;;  %s2592_s16 = sld [smem:[#allocation33_spill]]  ;;  %v1024_v41 = vrot.slane %v1015_v34, %v2382_v62  ;;  %v1032_v42 = vrot.slane %v1015_v34, %v2384_v63 }
 0x2cc   : > { %s1212_s13 = sshll.u32 %s570_s28, 4  ;;  %v1544_v35 = vpack.c.bf16 %v951_v30, %v949_v28  ;;  %v1549_v36 = vpack.c.bf16 %v992_v31, %v990_v29  ;;  %s2459_s20 = scalar_lea.sflag [#allocation16], %s498_s6  ;;  %s2442_s13 = int_to_ptr.vmem [resolvable:$true] %s1212_s13 }
 0x2cd   : > { %v953_v37 = vpop.f32.mrf.mxu1  ;;  %v994_v38 = vpop.f32.mrf.mxu0  ;;  %s1969_s30 = scalar_lea.vmem %s2442_s13, 256  ;;  %s2115_s3 = smov [#allocation15]  }
 0x2ce   : > { %1545 = vst [vmem:[%s570_s28] sm:$0xff] %v1544_v35   ;;  %1562 = vst [vmem:[%s570_s28 + $0x8] sm:$0xff] %v1549_v36   ;;  %p1970_p0 = scmp.ne.s32.totalorder %s2442_s13, %s1969_s30  ;;  %s1973_s4 = sshll.u32 %s2115_s3, 4  ;;  %s1974_s4 = int_to_ptr.vmem [resolvable:$false] %s1973_s4 }
 0x2cf   : > { %v1111_v43 = vpop.f32.mrf.mxu1  ;;  %v1152_v44 = vpop.f32.mrf.mxu0  ;;  %s1975_s24 = scalar_lea.vmem %s1974_s4, 512  ;;  %p1976_p4 = scmp.lt.s32.totalorder %s2442_s13, %s1974_s4 }
 0x2d0   : > { %p1971_p5 = pnand %p1970_p0, %p2297_p9  ;;  %p1977_p3 = scmp.lt.s32.totalorder %s1975_s24, %s1969_s30 }
 0x2d1   : > { %s2451_s29 = scalar_lea.hbm %s2592_s16, %s2398_s19 }
 0x2d2   : > { %p1972_p2 = pneg %p1971_p5  ;;  %p1978_p7 = por %p1977_p3, %p1976_p4 }
 0x2d4   : > { %p1979_p10 = pnand %p1978_p7, %p1972_p2 }
 0x2d6   : > { %1982 = shalt.err (!%p1979_p10)
}
 0x2d7   : > { %s1983_s27 = scalar_lea.hbm %s2451_s29, 256  ;;  %s1987_s12 = scalar_lea.hbm %s2592_s16, 512 }
 0x2d8   : > { %p1984_p8 = scmp.ne.s32.totalorder %s2451_s29, %s1983_s27  ;;  %p1988_p6 = scmp.lt.s32.totalorder %s2451_s29, %s2592_s16 }
 0x2d9   : > { %p1989_p13 = scmp.lt.s32.totalorder %s1987_s12, %s1983_s27 }
 0x2da   : > { %p1985_p11 = pnand %p1984_p8, %p2297_p9 }
 0x2db   : > { %p1990_p0 = por %p1989_p13, %p1988_p6 }
 0x2dc   : > { %p1986_p12 = pneg %p1985_p11 }
 0x2de   : > { %p1991_p5 = pnand %p1990_p0, %p1986_p12 }
 0x2e0   : > { %1994 = shalt.err (!%p1991_p5)
}
 0x2e1   : > { %1600 = dma.vmem_to_hbm [thread:$0]  (%p2297_p9), %s2442_s13, 256, %s2451_s29, %s2459_s20, %s2113_s2, %s2113_s2, %s2114_s14   ;;  %v1113_v45 = vpop.f32.mrf.mxu1  ;;  %v1154_v46 = vpop.f32.mrf.mxu0  ;;  %v1112_v47 = vadd.f32 %v1111_v43, %v1020_v39  ;;  %v1153_v48 = vadd.f32 %v1152_v44, %v1028_v40 }
 0x2e2   : > { %s577_s17 = scalar_lea.vmem [#allocation17], %s2390_s8  ;;  %v1114_v49 = vadd.f32 %v1113_v45, %v1024_v41  ;;  %v1155_v50 = vadd.f32 %v1154_v46, %v1032_v42  ;;  %s2593_s29 = sld [smem:[#allocation34_spill]] }
 0x2e3   : > { %s1229_s30 = sshll.u32 %s577_s17, 4  ;;  %v1115_v51 = vpop.f32.mrf.mxu1  ;;  %v1156_v52 = vpop.f32.mrf.mxu0  ;;  %s2116_s24 = smov [#allocation17]   ;;  %s2486_s30 = int_to_ptr.vmem [resolvable:$true] %s1229_s30 }
 0x2e4   : > { %v1554_v53 = vpack.c.bf16 %v1114_v49, %v1112_v47  ;;  %v1559_v54 = vpack.c.bf16 %v1155_v50, %v1153_v48  ;;  %s1995_s4 = scalar_lea.vmem %s2486_s30, 256  ;;  %s1999_s27 = sshll.u32 %s2116_s24, 4  ;;  %s2000_s27 = int_to_ptr.vmem [resolvable:$false] %s1999_s27 }
 0x2e5   : > { %v1116_v55 = vpop.f32.mrf.mxu1  ;;  %v1157_v56 = vpop.f32.mrf.mxu0  ;;  %p1996_p2 = scmp.ne.s32.totalorder %s2486_s30, %s1995_s4  ;;  %s2001_s6 = scalar_lea.vmem %s2000_s27, 512 }
 0x2e6   : > { %1555 = vst [vmem:[%s577_s17] sm:$0xff] %v1554_v53   ;;  %1563 = vst [vmem:[%s577_s17 + $0x8] sm:$0xff] %v1559_v54   ;;  %p2002_p7 = scmp.lt.s32.totalorder %s2486_s30, %s2000_s27  ;;  %p2003_p10 = scmp.lt.s32.totalorder %s2001_s6, %s1995_s4 }
 0x2e7   : > { %p1997_p4 = pnand %p1996_p2, %p2297_p9 }
 0x2e8   : > { %s2492_s8 = scalar_lea.hbm %s2593_s29, %s2398_s19  ;;  %p2004_p8 = por %p2003_p10, %p2002_p7 }
 0x2e9   : > { %p1998_p3 = pneg %p1997_p4 }
 0x2eb   : > { %p2005_p11 = pnand %p2004_p8, %p1998_p3 }
 0x2ed   : > { %2008 = shalt.err (!%p2005_p11)
}
 0x2ee   : > { %s2009_s19 = scalar_lea.hbm %s2492_s8, 256  ;;  %s2013_s11 = scalar_lea.hbm %s2593_s29, 512 }
 0x2ef   : > { %p2010_p12 = scmp.ne.s32.totalorder %s2492_s8, %s2009_s19  ;;  %p2014_p0 = scmp.lt.s32.totalorder %s2492_s8, %s2593_s29 }
 0x2f0   : > { %p2015_p5 = scmp.lt.s32.totalorder %s2013_s11, %s2009_s19 }
 0x2f1   : > { %p2011_p6 = pnand %p2010_p12, %p2297_p9 }
 0x2f2   : > { %p2016_p2 = por %p2015_p5, %p2014_p0 }
 0x2f3   : > { %p2012_p13 = pneg %p2011_p6 }
 0x2f5   : > { %p2017_p4 = pnand %p2016_p2, %p2012_p13 }
 0x2f7   : > { %2020 = shalt.err (!%p2017_p4)
}
 0x2f8   : > { %1601 = dma.vmem_to_hbm [thread:$0]  (%p2297_p9), %s2486_s30, 256, %s2492_s8, %s2459_s20, %s2113_s2, %s2113_s2, %s2114_s14  }
 0x2f9 PF: > { %s1244_s3 = sand.u32 1, %s2075_s21   ;;  %p2594_p3 = scmp.ge.s32.totalorder %s2095_s26, 2 }
 0x2fa   : > { %s1245_s13 = scalar_lea.sflag [#allocation4], %s1244_s3 }
 0x2fb   : > { %p1629_p7 = pnand %p2594_p3, %p2305_p1 }
 0x2fd   : > { %p1630_p10 = pneg %p1629_p7 }
 0x2ff   : > { %2066 = dma.done.wait (%p1630_p10), %s1245_s13, 256  }
 0x300   : > { %2068 = vsyncadd (%p1630_p10), %s1245_s13, 4294967040  ;;  %s2595_s18 = sadd.s32 4294967294, %s2095_s26  }
 0x301   : > { %s1253_s4 = sand.u32 1, %s2595_s18  }
 0x302   : > { %s1254_s24 = scalar_lea.sflag [#allocation16], %s1253_s4 }
 0x303   : > { %2070 = dma.done.wait (%p1630_p10), %s1254_s24, 512  }
 0x304   : > { %2072 = vsyncadd (%p1630_p10), %s1254_s24, 4294966784  ;;  %s37_s26 = sadd.s32 1, %s2095_s26   ;;  %s2596_s2 = sld [smem:[#allocation27_spill]] }
 0x305   : > { %p34_p9 = scmp.ge.s32.totalorder %s37_s26, 4   ;;  %s2597_s24 = sld [smem:[#allocation25_spill]] }
 0x306   : > { %s2598_s25 = sld [smem:[#allocation26_spill]]  ;;  %s2599_s21 = smov %s2079_s22 }
 0x307   : > { %s2600_s22 = smov %s2083_s23  ;;  %36 = sbr.rel (!%p34_p9) target bundleno = 20 (0x14), region = 179 }
 0x30a   : > { %s2601_s23 = smov %s2596_s2 }
 0x30c   :  { %1268 = vsyncpa [#allocation3], 1 }
 0x30d   :  { %1270 = vsyncpa [#allocation3 + $0x1], 1 }
 0x30e   :  { %1271 = vsyncpa [#allocation6], 1 }
 0x30f   :  { %1273 = vsyncpa [#allocation6 + $0x1], 1 }
 0x310   :  { %1274 = vsyncpa [#allocation9], 1 }
 0x311   :  { %1275 = vsyncpa [#allocation12], 1 }
 0x312   :  { %1276 = vsyncpa [#allocation4], 1 }
 0x313   :  { %1278 = vsyncpa [#allocation4 + $0x1], 1 }
 0x314   :  { %1279 = vsyncpa [#allocation16], 1 }
 0x315   :  { %1281 = vsyncpa [#allocation16 + $0x1], 1 }

</bundles_post_ra>
